<compile_context>
chip_gen: v7x
topology: tpu7x:2x2x1
jax: 0.10.0
libtpu: 0.0.40
codegen_flags: <defaults>
</compile_context>

<pallas_src>
import math
import functools

import numpy as np
import jax
import jax.numpy as jnp
from jax.experimental import pallas as pl
from jax.experimental.pallas import tpu as pltpu


def _round_up(x, m):
    return ((x + m - 1) // m) * m


def _pick_graph_tile(B, Np, D):
    """Number of graphs processed per grid step."""
    # Pipelined block bytes per graph (ef in/out f32, a_in/a_out bf16, mask, star),
    # x2 for double-buffering, plus a rough allowance for in-kernel temporaries.
    # Budgeted well below scoped VMEM so the same tile also fits v7x (64 MiB VMEM).
    block_bytes = 4 * Np * D * 2 + 2 * Np * Np * 2 + 4 * Np + 4 * D
    per_graph = 2 * block_bytes + 4 * Np * D * 12
    budget = 12 * 1024 * 1024
    g_vmem = max(1, budget // max(per_graph, 1))
    g_rows = max(1, 256 // Np)      # aim for ~256 node rows per step to feed the MXU
    return int(max(1, min(B, g_rows, g_vmem)))


# ----------------------------------------------------------------------------
# Pallas kernel
# ----------------------------------------------------------------------------
def _sgnn_kernel(layers, G, Np, D,
                 ef_ref, a_in_ref, a_out_ref, mask_ref,
                 m_in_ref, m_out_ref, w_hh_t_ref,
                 v_in_ref, v_out_ref, v_const_ref, b_hh_ref,
                 ef_out_ref, star_out_ref):
    f32 = jnp.float32
    bf16 = jnp.bfloat16
    GN = G * Np

    ef3 = ef_ref[...].astype(f32)            # (G, Np, D)
    a_in = a_in_ref[...]                     # (G, Np, Np) bf16
    a_out = a_out_ref[...]                   # (G, Np, Np) bf16
    mask3 = mask_ref[...].astype(f32)        # (G, Np, 1)

    m_in = m_in_ref[...]                     # (D, 3D) bf16  = w_ein^T @ w_ih_in^T
    m_out = m_out_ref[...]                   # (D, 3D) bf16  = w_eout^T @ w_ih_out^T
    w_hh_t = w_hh_t_ref[...]                 # (D, 3D) bf16
    v_in = v_in_ref[...]                     # (1, 3D) f32   = b_ein @ w_ih_in^T
    v_out = v_out_ref[...]                   # (1, 3D) f32   = b_eout @ w_ih_out^T
    v_const = v_const_ref[...]               # (1, 3D) f32   = b_iah@Wih_in + b_oah@Wih_out + b_ih
    b_hh = b_hh_ref[...]                     # (1, 3D) f32

    # Layer-invariant folded GRU-input bias (adjacency row sums), hoisted out of
    # the layer loop.
    rs_in = jnp.sum(a_in.astype(f32).reshape(GN, Np), axis=1, keepdims=True)    # (GN, 1)
    rs_out = jnp.sum(a_out.astype(f32).reshape(GN, Np), axis=1, keepdims=True)  # (GN, 1)
    gi_bias = rs_in * v_in + rs_out * v_out + v_const                           # (GN, 3D)

    # Average pooling -> initial star node hidden.
    counts = jnp.sum(mask3, axis=1, keepdims=True)                              # (G, 1, 1)
    star = (jnp.sum(ef3 * mask3, axis=1, keepdims=True)
            * pl.reciprocal(counts + 1e-30, approx=True))                       # (G, 1, D)

    inv_sqrt_d = 1.0 / math.sqrt(D)

    for _ in range(layers):
        # ----- GNNCell (GRU) -----
        efb3 = ef3.astype(bf16)
        p_in = jnp.einsum('gij,gjd->gid', a_in, efb3,
                          preferred_element_type=f32)                           # (G, Np, D)
        p_out = jnp.einsum('gij,gjd->gid', a_out, efb3,
                           preferred_element_type=f32)                          # (G, Np, D)

        ef_flat = ef3.reshape(GN, D)
        gi = (jnp.dot(p_in.reshape(GN, D).astype(bf16), m_in,
                      preferred_element_type=f32)
              + jnp.dot(p_out.reshape(GN, D).astype(bf16), m_out,
                        preferred_element_type=f32)
              + gi_bias)                                                        # (GN, 3D)
        gh = jnp.dot(ef_flat.astype(bf16), w_hh_t,
                     preferred_element_type=f32) + b_hh                         # (GN, 3D)

        i_r, i_i, i_n = gi[:, 0:D], gi[:, D:2 * D], gi[:, 2 * D:3 * D]
        h_r, h_i, h_n = gh[:, 0:D], gh[:, D:2 * D], gh[:, 2 * D:3 * D]
        reset_gate = jax.nn.sigmoid(i_r + h_r)
        input_gate = jax.nn.sigmoid(i_i + h_i)
        new_gate = jnp.tanh(i_n + reset_gate * h_n)
        ef_flat = new_gate + input_gate * (ef_flat - new_gate)                  # (GN, D)
        ef3 = ef_flat.reshape(G, Np, D)

        # ----- star / entity fusion -----
        sim = jnp.einsum('gnd,gkd->gnk', ef3, star,
                         preferred_element_type=f32) * inv_sqrt_d               # (G, Np, 1)
        alpha = jax.nn.sigmoid(sim)
        ef3 = (1.0 - alpha) * ef3 + alpha * star

        # ----- dot attention: query = star, memory = ef, masked softmax over nodes -----
        scores = jnp.einsum('gnd,gkd->gnk', ef3, star,
                            preferred_element_type=f32)                         # (G, Np, 1)
        scores = jnp.where(mask3 > 0.0, scores, -1e30)
        scores = scores - jnp.max(scores, axis=1, keepdims=True)
        w = jnp.exp(scores)
        w = w * pl.reciprocal(jnp.sum(w, axis=1, keepdims=True), approx=True)
        star = jnp.sum(w * ef3, axis=1, keepdims=True)                          # (G, 1, D)

    # TODO(synk): ef last dim D=32 (<128 lanes) still forces masked stores; a
    # lane-dense (G, N*D) output slab would need an in-kernel relayout.
    ef_out_ref[...] = ef3.astype(ef_out_ref.dtype)
    star_out_ref[...] = star.astype(star_out_ref.dtype)


# ----------------------------------------------------------------------------
# Wrapper
# ----------------------------------------------------------------------------
def sgnn_forward_pallas(entities_feature, adjacent_matrix, graph_mask, params, layers):
    """entities_feature: (B, N, D); adjacent_matrix: (B, N, 2N); graph_mask: (B, N)."""
    (w_ein, b_ein, w_eout, b_eout,
     w_ih, b_ih, w_hh, b_hh, b_iah, b_oah) = params

    B, N, D = entities_feature.shape
    assert adjacent_matrix.shape == (B, N, 2 * N)

    f32 = jnp.float32
    bf16 = jnp.bfloat16

    # ---- parameter preprocessing (pure XLA glue, done once) ----
    w_ein_t = jnp.asarray(w_ein, f32).T                   # (D, D)
    w_eout_t = jnp.asarray(w_eout, f32).T                 # (D, D)
    w_ih_t = jnp.asarray(w_ih, f32).T                     # (2D, 3D)
    w_ih_in_t = w_ih_t[:D]                                # (D, 3D)
    w_ih_out_t = w_ih_t[D:]                               # (D, 3D)

    m_in = (w_ein_t @ w_ih_in_t).astype(bf16)             # fold linear_edge_in into GRU input
    m_out = (w_eout_t @ w_ih_out_t).astype(bf16)          # fold linear_edge_out into GRU input
    w_hh_t = jnp.asarray(w_hh, f32).T.astype(bf16)        # (D, 3D)

    b_ein_r = jnp.asarray(b_ein, f32).reshape(1, D)
    b_eout_r = jnp.asarray(b_eout, f32).reshape(1, D)
    b_iah_r = jnp.asarray(b_iah, f32).reshape(1, D)
    b_oah_r = jnp.asarray(b_oah, f32).reshape(1, D)
    v_in = b_ein_r @ w_ih_in_t                            # (1, 3D)
    v_out = b_eout_r @ w_ih_out_t                         # (1, 3D)
    v_const = (b_iah_r @ w_ih_in_t + b_oah_r @ w_ih_out_t
               + jnp.asarray(b_ih, f32).reshape(1, 3 * D))  # (1, 3D)
    b_hh_r = jnp.asarray(b_hh, f32).reshape(1, 3 * D)

    # ---- input preprocessing: split adjacency, pad nodes to a sublane multiple,
    #      pad batch to a multiple of the per-step graph tile G ----
    Np = _round_up(N, 8)
    G = _pick_graph_tile(B, Np, D)
    B_pad = _round_up(B, G)
    pad_b, pad_n = B_pad - B, Np - N

    ef = jnp.asarray(entities_feature, f32)
    adj = jnp.asarray(adjacent_matrix, f32)
    mask = jnp.asarray(graph_mask, f32)

    a_in = jnp.pad(adj[:, :, :N], ((0, pad_b), (0, pad_n), (0, pad_n))).astype(bf16)
    a_out = jnp.pad(adj[:, :, N:2 * N], ((0, pad_b), (0, pad_n), (0, pad_n))).astype(bf16)
    ef_p = jnp.pad(ef, ((0, pad_b), (0, pad_n), (0, 0)))
    mask_p = jnp.pad(mask, ((0, pad_b), (0, pad_n))).reshape(B_pad, Np, 1)

    kernel = functools.partial(_sgnn_kernel, layers, G, Np, D)
    param_spec = lambda shape: pl.BlockSpec(shape, lambda b: (0,) * len(shape))

    ef_out, star_out = pl.pallas_call(
        kernel,
        out_shape=(
            jax.ShapeDtypeStruct((B_pad, Np, D), f32),
            jax.ShapeDtypeStruct((B_pad, 1, D), f32),
        ),
        grid=(B_pad // G,),
        in_specs=[
            pl.BlockSpec((G, Np, D), lambda b: (b, 0, 0)),     # entities_feature
            pl.BlockSpec((G, Np, Np), lambda b: (b, 0, 0)),    # a_in
            pl.BlockSpec((G, Np, Np), lambda b: (b, 0, 0)),    # a_out
            pl.BlockSpec((G, Np, 1), lambda b: (b, 0, 0)),     # graph_mask
            param_spec((D, 3 * D)),                            # m_in
            param_spec((D, 3 * D)),                            # m_out
            param_spec((D, 3 * D)),                            # w_hh_t
            param_spec((1, 3 * D)),                            # v_in
            param_spec((1, 3 * D)),                            # v_out
            param_spec((1, 3 * D)),                            # v_const
            param_spec((1, 3 * D)),                            # b_hh
        ],
        out_specs=(
            pl.BlockSpec((G, Np, D), lambda b: (b, 0, 0)),
            pl.BlockSpec((G, 1, D), lambda b: (b, 0, 0)),
        ),
        compiler_params=pltpu.CompilerParams(
            dimension_semantics=("parallel",),
            vmem_limit_bytes=32 * 1024 * 1024),
    )(ef_p, a_in, a_out, mask_p,
      m_in, m_out, w_hh_t, v_in, v_out, v_const, b_hh_r)

    return ef_out[:B, :N, :], star_out[:B, 0, :]


# ----------------------------------------------------------------------------
# Pure-JAX reference (mirrors the PyTorch forward) for correctness check
# ----------------------------------------------------------------------------
def sgnn_forward_ref(ef, adj, mask, params, layers):
    (w_ein, b_ein, w_eout, b_eout,
     w_ih, b_ih, w_hh, b_hh, b_iah, b_oah) = params
    B, N, D = ef.shape
    maskf = mask.astype(jnp.float32)
    entity_num = jnp.sum(maskf, axis=1)
    star = jnp.sum(ef * maskf[..., None], axis=1) / (entity_num[:, None] + 1e-30)
    for _ in range(layers):
        ein = ef @ w_ein.T + b_ein
        eout = ef @ w_eout.T + b_eout
        input_in = jnp.matmul(adj[:, :, :N], ein) + b_iah
        input_out = jnp.matmul(adj[:, :, N:2 * N], eout) + b_oah
        inputs = jnp.concatenate([input_in, input_out], axis=2)
        gi = inputs @ w_ih.T + b_ih
        gh = ef @ w_hh.T + b_hh
        i_r, i_i, i_n = jnp.split(gi, 3, axis=2)
        h_r, h_i, h_n = jnp.split(gh, 3, axis=2)
        r = jax.nn.sigmoid(i_r + h_r)
        z = jax.nn.sigmoid(i_i + h_i)
        n = jnp.tanh(i_n + r * h_n)
        ef = n + z * (ef - n)
        sim = jnp.einsum('bnd,bd->bn', ef, star) / math.sqrt(D)
        alpha = jax.nn.sigmoid(sim)[..., None]
        ef = (1.0 - alpha) * ef + alpha * star[:, None, :]
        scores = jnp.einsum('bnd,bd->bn', ef, star)
        scores = jnp.where(maskf > 0.0, scores, -1e30)
        w = jax.nn.softmax(scores, axis=1)
        star = jnp.einsum('bn,bnd->bd', w, ef)
    return ef, star


# ----------------------------------------------------------------------------
# Main
# ----------------------------------------------------------------------------
if __name__ == "__main__":
    B, N, D = 2, 8, 32
    LAYERS = 2
    stdv = 1.0 / math.sqrt(D)

    key = jax.random.PRNGKey(0)
    keys = jax.random.split(key, 16)

    def u(k, shape):
        return jax.random.uniform(k, shape, jnp.float32, minval=-stdv, maxval=stdv)

    # Parameters (same shapes as in SGNN.__init__, uniform(-stdv, stdv) init).
    w_ein, b_ein = u(keys[0], (D, D)), u(keys[1], (D,))          # linear_edge_in
    w_eout, b_eout = u(keys[2], (D, D)), u(keys[3], (D,))        # linear_edge_out
    w_ih, b_ih = u(keys[4], (3 * D, 2 * D)), u(keys[5], (3 * D,))
    w_hh, b_hh = u(keys[6], (3 * D, D)), u(keys[7], (3 * D,))
    b_iah, b_oah = u(keys[8], (D,)), u(keys[9], (D,))
    params = (w_ein, b_ein, w_eout, b_eout, w_ih, b_ih, w_hh, b_hh, b_iah, b_oah)
    # (linear_edge_f and the attention hidden projection exist in __init__ but are
    #  unused in forward(), so they are intentionally not created.)

    # Inputs.
    entities_feature = jax.random.normal(keys[10], (B, N, D), jnp.float32)
    adjacent_matrix = jax.random.uniform(keys[11], (B, N, 2 * N), jnp.float32)
    graph_mask = jnp.array(
        [[1, 1, 1, 1, 1, 1, 0, 0],
         [1, 1, 1, 1, 1, 0, 0, 0]], dtype=jnp.float32)

    ef_out, star_out = sgnn_forward_pallas(
        entities_feature, adjacent_matrix, graph_mask, params, LAYERS)
    ef_out = jax.block_until_ready(ef_out)
    star_out = jax.block_until_ready(star_out)

    ef_ref, star_ref = sgnn_forward_ref(
        entities_feature, adjacent_matrix, graph_mask, params, LAYERS)

    np.testing.assert_allclose(np.asarray(ef_out), np.asarray(ef_ref),
                               rtol=2e-2, atol=2e-2)
    np.testing.assert_allclose(np.asarray(star_out), np.asarray(star_ref),
                               rtol=2e-2, atol=2e-2)

    print("KERNEL_OK")
</pallas_src>

<mosaic_0001>
module attributes {stable_mosaic.version = 11 : i64} {
  func.func @_sgnn_kernel(%arg0: i32, %arg1: memref<2x8x32xf32, #tpu.memory_space<vmem>>, %arg2: memref<2x8x8xbf16, #tpu.memory_space<vmem>>, %arg3: memref<2x8x8xbf16, #tpu.memory_space<vmem>>, %arg4: memref<2x8x1xf32, #tpu.memory_space<vmem>>, %arg5: memref<32x96xbf16, #tpu.memory_space<vmem>>, %arg6: memref<32x96xbf16, #tpu.memory_space<vmem>>, %arg7: memref<32x96xbf16, #tpu.memory_space<vmem>>, %arg8: memref<1x96xf32, #tpu.memory_space<vmem>>, %arg9: memref<1x96xf32, #tpu.memory_space<vmem>>, %arg10: memref<1x96xf32, #tpu.memory_space<vmem>>, %arg11: memref<1x96xf32, #tpu.memory_space<vmem>>, %arg12: memref<2x8x32xf32, #tpu.memory_space<vmem>>, %arg13: memref<2x1x32xf32, #tpu.memory_space<vmem>>) attributes {dimension_semantics = [#tpu.dimension_semantics<parallel>], iteration_bounds = array<i64: 1>, scalar_prefetch = 0 : i64, scratch_operands = 0 : i64, tpu.core_type = #tpu.core_type<tc>, window_params = [{transform_indices = @transform_0, window_bounds = array<i64: 2, 8, 32>}, {transform_indices = @transform_1, window_bounds = array<i64: 2, 8, 8>}, {transform_indices = @transform_2, window_bounds = array<i64: 2, 8, 8>}, {transform_indices = @transform_3, window_bounds = array<i64: 2, 8, 1>}, {pipeline_mode = #tpu.pipeline_mode<synchronous>, transform_indices = @transform_4, window_bounds = array<i64: 32, 96>}, {pipeline_mode = #tpu.pipeline_mode<synchronous>, transform_indices = @transform_5, window_bounds = array<i64: 32, 96>}, {pipeline_mode = #tpu.pipeline_mode<synchronous>, transform_indices = @transform_6, window_bounds = array<i64: 32, 96>}, {pipeline_mode = #tpu.pipeline_mode<synchronous>, transform_indices = @transform_7, window_bounds = array<i64: 1, 96>}, {pipeline_mode = #tpu.pipeline_mode<synchronous>, transform_indices = @transform_8, window_bounds = array<i64: 1, 96>}, {pipeline_mode = #tpu.pipeline_mode<synchronous>, transform_indices = @transform_9, window_bounds = array<i64: 1, 96>}, {pipeline_mode = #tpu.pipeline_mode<synchronous>, transform_indices = @transform_10, window_bounds = array<i64: 1, 96>}, {transform_indices = @transform_11, window_bounds = array<i64: 2, 8, 32>}, {transform_indices = @transform_12, window_bounds = array<i64: 2, 1, 32>}]} {
    %c0 = arith.constant 0 : index
    %c0_0 = arith.constant 0 : index
    %c0_1 = arith.constant 0 : index
    %0 = vector.load %arg1[%c0, %c0_0, %c0_1] : memref<2x8x32xf32, #tpu.memory_space<vmem>>, vector<2x8x32xf32>
    %c0_2 = arith.constant 0 : index
    %c0_3 = arith.constant 0 : index
    %c0_4 = arith.constant 0 : index
    %1 = vector.load %arg2[%c0_2, %c0_3, %c0_4] : memref<2x8x8xbf16, #tpu.memory_space<vmem>>, vector<2x8x8xbf16>
    %c0_5 = arith.constant 0 : index
    %c0_6 = arith.constant 0 : index
    %c0_7 = arith.constant 0 : index
    %2 = vector.load %arg3[%c0_5, %c0_6, %c0_7] : memref<2x8x8xbf16, #tpu.memory_space<vmem>>, vector<2x8x8xbf16>
    %c0_8 = arith.constant 0 : index
    %c0_9 = arith.constant 0 : index
    %c0_10 = arith.constant 0 : index
    %3 = vector.load %arg4[%c0_8, %c0_9, %c0_10] : memref<2x8x1xf32, #tpu.memory_space<vmem>>, vector<2x8x1xf32>
    %c0_11 = arith.constant 0 : index
    %c0_12 = arith.constant 0 : index
    %4 = vector.load %arg5[%c0_11, %c0_12] : memref<32x96xbf16, #tpu.memory_space<vmem>>, vector<32x96xbf16>
    %c0_13 = arith.constant 0 : index
    %c0_14 = arith.constant 0 : index
    %5 = vector.load %arg6[%c0_13, %c0_14] : memref<32x96xbf16, #tpu.memory_space<vmem>>, vector<32x96xbf16>
    %c0_15 = arith.constant 0 : index
    %c0_16 = arith.constant 0 : index
    %6 = vector.load %arg7[%c0_15, %c0_16] : memref<32x96xbf16, #tpu.memory_space<vmem>>, vector<32x96xbf16>
    %c0_17 = arith.constant 0 : index
    %c0_18 = arith.constant 0 : index
    %7 = vector.load %arg8[%c0_17, %c0_18] : memref<1x96xf32, #tpu.memory_space<vmem>>, vector<1x96xf32>
    %c0_19 = arith.constant 0 : index
    %c0_20 = arith.constant 0 : index
    %8 = vector.load %arg9[%c0_19, %c0_20] : memref<1x96xf32, #tpu.memory_space<vmem>>, vector<1x96xf32>
    %c0_21 = arith.constant 0 : index
    %c0_22 = arith.constant 0 : index
    %9 = vector.load %arg10[%c0_21, %c0_22] : memref<1x96xf32, #tpu.memory_space<vmem>>, vector<1x96xf32>
    %c0_23 = arith.constant 0 : index
    %c0_24 = arith.constant 0 : index
    %10 = vector.load %arg11[%c0_23, %c0_24] : memref<1x96xf32, #tpu.memory_space<vmem>>, vector<1x96xf32>
    %11 = arith.extf %1 : vector<2x8x8xbf16> to vector<2x8x8xf32>
    %12 = vector.shape_cast %11 : vector<2x8x8xf32> to vector<16x8xf32>
    %cst = arith.constant dense<0.000000e+00> : vector<16xf32>
    %13 = vector.multi_reduction <add>, %12, %cst [1] : vector<16x8xf32> to vector<16xf32>
    %14 = vector.shape_cast %13 : vector<16xf32> to vector<16x1xf32>
    %15 = arith.extf %2 : vector<2x8x8xbf16> to vector<2x8x8xf32>
    %16 = vector.shape_cast %15 : vector<2x8x8xf32> to vector<16x8xf32>
    %cst_25 = arith.constant dense<0.000000e+00> : vector<16xf32>
    %17 = vector.multi_reduction <add>, %16, %cst_25 [1] : vector<16x8xf32> to vector<16xf32>
    %18 = vector.shape_cast %17 : vector<16xf32> to vector<16x1xf32>
    %19 = vector.broadcast %14 : vector<16x1xf32> to vector<16x96xf32>
    %20 = vector.broadcast %7 : vector<1x96xf32> to vector<16x96xf32>
    %21 = arith.mulf %19, %20 : vector<16x96xf32>
    %22 = vector.broadcast %18 : vector<16x1xf32> to vector<16x96xf32>
    %23 = vector.broadcast %8 : vector<1x96xf32> to vector<16x96xf32>
    %24 = arith.mulf %22, %23 : vector<16x96xf32>
    %25 = arith.addf %21, %24 : vector<16x96xf32>
    %26 = vector.broadcast %9 : vector<1x96xf32> to vector<16x96xf32>
    %27 = arith.addf %25, %26 : vector<16x96xf32>
    %cst_26 = arith.constant dense<0.000000e+00> : vector<2x1xf32>
    %28 = vector.multi_reduction <add>, %3, %cst_26 [1] : vector<2x8x1xf32> to vector<2x1xf32>
    %29 = vector.shape_cast %28 : vector<2x1xf32> to vector<2x1x1xf32>
    %30 = vector.broadcast %3 : vector<2x8x1xf32> to vector<2x8x32xf32>
    %31 = arith.mulf %0, %30 : vector<2x8x32xf32>
    %cst_27 = arith.constant dense<0.000000e+00> : vector<2x32xf32>
    %32 = vector.multi_reduction <add>, %31, %cst_27 [1] : vector<2x8x32xf32> to vector<2x32xf32>
    %33 = vector.shape_cast %32 : vector<2x32xf32> to vector<2x1x32xf32>
    %cst_28 = arith.constant 1.000000e-30 : f32
    %34 = vector.broadcast %cst_28 : f32 to vector<2x1x1xf32>
    %35 = arith.addf %29, %34 : vector<2x1x1xf32>
    %36 = tpu.reciprocal %35 {approx = true} : vector<2x1x1xf32> -> vector<2x1x1xf32>
    %37 = vector.broadcast %36 : vector<2x1x1xf32> to vector<2x1x32xf32>
    %38 = arith.mulf %33, %37 : vector<2x1x32xf32>
    %39 = arith.truncf %0 : vector<2x8x32xf32> to vector<2x8x32xbf16>
    "tpu.trace_start"() <{level = 10 : i32, message = "gij,gjd->gid"}> : () -> ()
    %cst_29 = arith.constant dense<0.000000e+00> : vector<2x8x32xf32>
    %40 = tpu.matmul %1, %39, %cst_29 {dimension_numbers = #tpu.dot_dimension_numbers<[2], [1], [1], [2], [0, 0, 0, 1, 1, 2], [0], [0]>} : vector<2x8x8xbf16>, vector<2x8x32xbf16>, vector<2x8x32xf32> -> vector<2x8x32xf32>
    %cst_30 = arith.constant dense<0.000000e+00> : vector<2x8x32xf32>
    %41 = tpu.matmul %2, %39, %cst_30 {dimension_numbers = #tpu.dot_dimension_numbers<[2], [1], [1], [2], [0, 0, 0, 1, 1, 2], [0], [0]>} : vector<2x8x8xbf16>, vector<2x8x32xbf16>, vector<2x8x32xf32> -> vector<2x8x32xf32>
    "tpu.trace_stop"() : () -> ()
    %42 = vector.shape_cast %0 : vector<2x8x32xf32> to vector<16x32xf32>
    %43 = vector.shape_cast %40 : vector<2x8x32xf32> to vector<16x32xf32>
    %44 = arith.truncf %43 : vector<16x32xf32> to vector<16x32xbf16>
    %cst_31 = arith.constant dense<0.000000e+00> : vector<16x96xf32>
    %45 = tpu.matmul %44, %4, %cst_31 {dimension_numbers = #tpu.dot_dimension_numbers<[1], [0], [0], [1], [0, 0, 1, 1], [], []>} : vector<16x32xbf16>, vector<32x96xbf16>, vector<16x96xf32> -> vector<16x96xf32>
    %46 = vector.shape_cast %41 : vector<2x8x32xf32> to vector<16x32xf32>
    %47 = arith.truncf %46 : vector<16x32xf32> to vector<16x32xbf16>
    %cst_32 = arith.constant dense<0.000000e+00> : vector<16x96xf32>
    %48 = tpu.matmul %47, %5, %cst_32 {dimension_numbers = #tpu.dot_dimension_numbers<[1], [0], [0], [1], [0, 0, 1, 1], [], []>} : vector<16x32xbf16>, vector<32x96xbf16>, vector<16x96xf32> -> vector<16x96xf32>
    %49 = arith.addf %45, %48 : vector<16x96xf32>
    %50 = arith.addf %49, %27 : vector<16x96xf32>
    %51 = arith.truncf %42 : vector<16x32xf32> to vector<16x32xbf16>
    %cst_33 = arith.constant dense<0.000000e+00> : vector<16x96xf32>
    %52 = tpu.matmul %51, %6, %cst_33 {dimension_numbers = #tpu.dot_dimension_numbers<[1], [0], [0], [1], [0, 0, 1, 1], [], []>} : vector<16x32xbf16>, vector<32x96xbf16>, vector<16x96xf32> -> vector<16x96xf32>
    %53 = vector.broadcast %10 : vector<1x96xf32> to vector<16x96xf32>
    %54 = arith.addf %52, %53 : vector<16x96xf32>
    %55 = vector.extract_strided_slice %50 {offsets = [0, 0], sizes = [16, 32], strides = [1, 1]} : vector<16x96xf32> to vector<16x32xf32>
    %56 = vector.extract_strided_slice %50 {offsets = [0, 32], sizes = [16, 32], strides = [1, 1]} : vector<16x96xf32> to vector<16x32xf32>
    %57 = vector.extract_strided_slice %50 {offsets = [0, 64], sizes = [16, 32], strides = [1, 1]} : vector<16x96xf32> to vector<16x32xf32>
    %58 = vector.extract_strided_slice %54 {offsets = [0, 0], sizes = [16, 32], strides = [1, 1]} : vector<16x96xf32> to vector<16x32xf32>
    %59 = vector.extract_strided_slice %54 {offsets = [0, 32], sizes = [16, 32], strides = [1, 1]} : vector<16x96xf32> to vector<16x32xf32>
    %60 = vector.extract_strided_slice %54 {offsets = [0, 64], sizes = [16, 32], strides = [1, 1]} : vector<16x96xf32> to vector<16x32xf32>
    %61 = arith.addf %55, %58 : vector<16x32xf32>
    %62 = arith.negf %61 : vector<16x32xf32>
    %63 = math.exp %62 : vector<16x32xf32>
    %cst_34 = arith.constant 1.000000e+00 : f32
    %64 = vector.broadcast %cst_34 : f32 to vector<16x32xf32>
    %65 = arith.addf %64, %63 : vector<16x32xf32>
    %66 = arith.divf %64, %65 : vector<16x32xf32>
    %67 = arith.addf %56, %59 : vector<16x32xf32>
    %68 = arith.negf %67 : vector<16x32xf32>
    %69 = math.exp %68 : vector<16x32xf32>
    %cst_35 = arith.constant 1.000000e+00 : f32
    %70 = vector.broadcast %cst_35 : f32 to vector<16x32xf32>
    %71 = arith.addf %70, %69 : vector<16x32xf32>
    %72 = arith.divf %70, %71 : vector<16x32xf32>
    %73 = arith.mulf %66, %60 : vector<16x32xf32>
    %74 = arith.addf %57, %73 : vector<16x32xf32>
    %75 = math.tanh %74 : vector<16x32xf32>
    %76 = arith.subf %42, %75 : vector<16x32xf32>
    %77 = arith.mulf %72, %76 : vector<16x32xf32>
    %78 = arith.addf %75, %77 : vector<16x32xf32>
    %79 = vector.shape_cast %78 : vector<16x32xf32> to vector<2x8x32xf32>
    "tpu.trace_start"() <{level = 10 : i32, message = "gnd,gkd->gnk"}> : () -> ()
    %cst_36 = arith.constant dense<0.000000e+00> : vector<2x8x1xf32>
    %80 = tpu.matmul %79, %38, %cst_36 {dimension_numbers = #tpu.dot_dimension_numbers<[2], [2], [1], [1], [0, 0, 0, 1, 1, 1], [0], [0]>} : vector<2x8x32xf32>, vector<2x1x32xf32>, vector<2x8x1xf32> -> vector<2x8x1xf32>
    "tpu.trace_stop"() : () -> ()
    %cst_37 = arith.constant 0.176776692 : f32
    %81 = vector.broadcast %cst_37 : f32 to vector<2x8x1xf32>
    %82 = arith.mulf %80, %81 : vector<2x8x1xf32>
    %83 = arith.negf %82 : vector<2x8x1xf32>
    %84 = math.exp %83 : vector<2x8x1xf32>
    %cst_38 = arith.constant 1.000000e+00 : f32
    %85 = vector.broadcast %cst_38 : f32 to vector<2x8x1xf32>
    %86 = arith.addf %85, %84 : vector<2x8x1xf32>
    %87 = arith.divf %85, %86 : vector<2x8x1xf32>
    %cst_39 = arith.constant 1.000000e+00 : f32
    %88 = vector.broadcast %cst_39 : f32 to vector<2x8x1xf32>
    %89 = arith.subf %88, %87 : vector<2x8x1xf32>
    %90 = vector.broadcast %89 : vector<2x8x1xf32> to vector<2x8x32xf32>
    %91 = arith.mulf %90, %79 : vector<2x8x32xf32>
    %92 = vector.broadcast %87 : vector<2x8x1xf32> to vector<2x8x32xf32>
    %93 = vector.broadcast %38 : vector<2x1x32xf32> to vector<2x8x32xf32>
    %94 = arith.mulf %92, %93 : vector<2x8x32xf32>
    %95 = arith.addf %91, %94 : vector<2x8x32xf32>
    "tpu.trace_start"() <{level = 10 : i32, message = "gnd,gkd->gnk"}> : () -> ()
    %cst_40 = arith.constant dense<0.000000e+00> : vector<2x8x1xf32>
    %96 = tpu.matmul %95, %38, %cst_40 {dimension_numbers = #tpu.dot_dimension_numbers<[2], [2], [1], [1], [0, 0, 0, 1, 1, 1], [0], [0]>} : vector<2x8x32xf32>, vector<2x1x32xf32>, vector<2x8x1xf32> -> vector<2x8x1xf32>
    %cst_41 = arith.constant 0.000000e+00 : f32
    "tpu.trace_stop"() : () -> ()
    %97 = vector.broadcast %cst_41 : f32 to vector<2x8x1xf32>
    %98 = arith.cmpf ogt, %3, %97 : vector<2x8x1xf32>
    %cst_42 = arith.constant -1.000000e+30 : f32
    %99 = vector.broadcast %cst_42 : f32 to vector<2x8x1xf32>
    %100 = arith.select %98, %96, %99 : vector<2x8x1xi1>, vector<2x8x1xf32>
    %cst_43 = arith.constant dense<0xFF800000> : vector<2x1xf32>
    %101 = vector.multi_reduction <maximumf>, %100, %cst_43 [1] : vector<2x8x1xf32> to vector<2x1xf32>
    %102 = vector.shape_cast %101 : vector<2x1xf32> to vector<2x1x1xf32>
    %103 = vector.broadcast %102 : vector<2x1x1xf32> to vector<2x8x1xf32>
    %104 = arith.subf %100, %103 : vector<2x8x1xf32>
    %105 = math.exp %104 : vector<2x8x1xf32>
    %cst_44 = arith.constant dense<0.000000e+00> : vector<2x1xf32>
    %106 = vector.multi_reduction <add>, %105, %cst_44 [1] : vector<2x8x1xf32> to vector<2x1xf32>
    %107 = vector.shape_cast %106 : vector<2x1xf32> to vector<2x1x1xf32>
    %108 = tpu.reciprocal %107 {approx = true} : vector<2x1x1xf32> -> vector<2x1x1xf32>
    %109 = vector.broadcast %108 : vector<2x1x1xf32> to vector<2x8x1xf32>
    %110 = arith.mulf %105, %109 : vector<2x8x1xf32>
    %111 = vector.broadcast %110 : vector<2x8x1xf32> to vector<2x8x32xf32>
    %112 = arith.mulf %111, %95 : vector<2x8x32xf32>
    %cst_45 = arith.constant dense<0.000000e+00> : vector<2x32xf32>
    %113 = vector.multi_reduction <add>, %112, %cst_45 [1] : vector<2x8x32xf32> to vector<2x32xf32>
    %114 = vector.shape_cast %113 : vector<2x32xf32> to vector<2x1x32xf32>
    %115 = arith.truncf %95 : vector<2x8x32xf32> to vector<2x8x32xbf16>
    "tpu.trace_start"() <{level = 10 : i32, message = "gij,gjd->gid"}> : () -> ()
    %cst_46 = arith.constant dense<0.000000e+00> : vector<2x8x32xf32>
    %116 = tpu.matmul %1, %115, %cst_46 {dimension_numbers = #tpu.dot_dimension_numbers<[2], [1], [1], [2], [0, 0, 0, 1, 1, 2], [0], [0]>} : vector<2x8x8xbf16>, vector<2x8x32xbf16>, vector<2x8x32xf32> -> vector<2x8x32xf32>
    %cst_47 = arith.constant dense<0.000000e+00> : vector<2x8x32xf32>
    %117 = tpu.matmul %2, %115, %cst_47 {dimension_numbers = #tpu.dot_dimension_numbers<[2], [1], [1], [2], [0, 0, 0, 1, 1, 2], [0], [0]>} : vector<2x8x8xbf16>, vector<2x8x32xbf16>, vector<2x8x32xf32> -> vector<2x8x32xf32>
    "tpu.trace_stop"() : () -> ()
    %118 = vector.shape_cast %95 : vector<2x8x32xf32> to vector<16x32xf32>
    %119 = vector.shape_cast %116 : vector<2x8x32xf32> to vector<16x32xf32>
    %120 = arith.truncf %119 : vector<16x32xf32> to vector<16x32xbf16>
    %cst_48 = arith.constant dense<0.000000e+00> : vector<16x96xf32>
    %121 = tpu.matmul %120, %4, %cst_48 {dimension_numbers = #tpu.dot_dimension_numbers<[1], [0], [0], [1], [0, 0, 1, 1], [], []>} : vector<16x32xbf16>, vector<32x96xbf16>, vector<16x96xf32> -> vector<16x96xf32>
    %122 = vector.shape_cast %117 : vector<2x8x32xf32> to vector<16x32xf32>
    %123 = arith.truncf %122 : vector<16x32xf32> to vector<16x32xbf16>
    %cst_49 = arith.constant dense<0.000000e+00> : vector<16x96xf32>
    %124 = tpu.matmul %123, %5, %cst_49 {dimension_numbers = #tpu.dot_dimension_numbers<[1], [0], [0], [1], [0, 0, 1, 1], [], []>} : vector<16x32xbf16>, vector<32x96xbf16>, vector<16x96xf32> -> vector<16x96xf32>
    %125 = arith.addf %121, %124 : vector<16x96xf32>
    %126 = arith.addf %125, %27 : vector<16x96xf32>
    %127 = arith.truncf %118 : vector<16x32xf32> to vector<16x32xbf16>
    %cst_50 = arith.constant dense<0.000000e+00> : vector<16x96xf32>
    %128 = tpu.matmul %127, %6, %cst_50 {dimension_numbers = #tpu.dot_dimension_numbers<[1], [0], [0], [1], [0, 0, 1, 1], [], []>} : vector<16x32xbf16>, vector<32x96xbf16>, vector<16x96xf32> -> vector<16x96xf32>
    %129 = vector.broadcast %10 : vector<1x96xf32> to vector<16x96xf32>
    %130 = arith.addf %128, %129 : vector<16x96xf32>
    %131 = vector.extract_strided_slice %126 {offsets = [0, 0], sizes = [16, 32], strides = [1, 1]} : vector<16x96xf32> to vector<16x32xf32>
    %132 = vector.extract_strided_slice %126 {offsets = [0, 32], sizes = [16, 32], strides = [1, 1]} : vector<16x96xf32> to vector<16x32xf32>
    %133 = vector.extract_strided_slice %126 {offsets = [0, 64], sizes = [16, 32], strides = [1, 1]} : vector<16x96xf32> to vector<16x32xf32>
    %134 = vector.extract_strided_slice %130 {offsets = [0, 0], sizes = [16, 32], strides = [1, 1]} : vector<16x96xf32> to vector<16x32xf32>
    %135 = vector.extract_strided_slice %130 {offsets = [0, 32], sizes = [16, 32], strides = [1, 1]} : vector<16x96xf32> to vector<16x32xf32>
    %136 = vector.extract_strided_slice %130 {offsets = [0, 64], sizes = [16, 32], strides = [1, 1]} : vector<16x96xf32> to vector<16x32xf32>
    %137 = arith.addf %131, %134 : vector<16x32xf32>
    %138 = arith.negf %137 : vector<16x32xf32>
    %139 = math.exp %138 : vector<16x32xf32>
    %cst_51 = arith.constant 1.000000e+00 : f32
    %140 = vector.broadcast %cst_51 : f32 to vector<16x32xf32>
    %141 = arith.addf %140, %139 : vector<16x32xf32>
    %142 = arith.divf %140, %141 : vector<16x32xf32>
    %143 = arith.addf %132, %135 : vector<16x32xf32>
    %144 = arith.negf %143 : vector<16x32xf32>
    %145 = math.exp %144 : vector<16x32xf32>
    %cst_52 = arith.constant 1.000000e+00 : f32
    %146 = vector.broadcast %cst_52 : f32 to vector<16x32xf32>
    %147 = arith.addf %146, %145 : vector<16x32xf32>
    %148 = arith.divf %146, %147 : vector<16x32xf32>
    %149 = arith.mulf %142, %136 : vector<16x32xf32>
    %150 = arith.addf %133, %149 : vector<16x32xf32>
    %151 = math.tanh %150 : vector<16x32xf32>
    %152 = arith.subf %118, %151 : vector<16x32xf32>
    %153 = arith.mulf %148, %152 : vector<16x32xf32>
    %154 = arith.addf %151, %153 : vector<16x32xf32>
    %155 = vector.shape_cast %154 : vector<16x32xf32> to vector<2x8x32xf32>
    "tpu.trace_start"() <{level = 10 : i32, message = "gnd,gkd->gnk"}> : () -> ()
    %cst_53 = arith.constant dense<0.000000e+00> : vector<2x8x1xf32>
    %156 = tpu.matmul %155, %114, %cst_53 {dimension_numbers = #tpu.dot_dimension_numbers<[2], [2], [1], [1], [0, 0, 0, 1, 1, 1], [0], [0]>} : vector<2x8x32xf32>, vector<2x1x32xf32>, vector<2x8x1xf32> -> vector<2x8x1xf32>
    "tpu.trace_stop"() : () -> ()
    %cst_54 = arith.constant 0.176776692 : f32
    %157 = vector.broadcast %cst_54 : f32 to vector<2x8x1xf32>
    %158 = arith.mulf %156, %157 : vector<2x8x1xf32>
    %159 = arith.negf %158 : vector<2x8x1xf32>
    %160 = math.exp %159 : vector<2x8x1xf32>
    %cst_55 = arith.constant 1.000000e+00 : f32
    %161 = vector.broadcast %cst_55 : f32 to vector<2x8x1xf32>
    %162 = arith.addf %161, %160 : vector<2x8x1xf32>
    %163 = arith.divf %161, %162 : vector<2x8x1xf32>
    %cst_56 = arith.constant 1.000000e+00 : f32
    %164 = vector.broadcast %cst_56 : f32 to vector<2x8x1xf32>
    %165 = arith.subf %164, %163 : vector<2x8x1xf32>
    %166 = vector.broadcast %165 : vector<2x8x1xf32> to vector<2x8x32xf32>
    %167 = arith.mulf %166, %155 : vector<2x8x32xf32>
    %168 = vector.broadcast %163 : vector<2x8x1xf32> to vector<2x8x32xf32>
    %169 = vector.broadcast %114 : vector<2x1x32xf32> to vector<2x8x32xf32>
    %170 = arith.mulf %168, %169 : vector<2x8x32xf32>
    %171 = arith.addf %167, %170 : vector<2x8x32xf32>
    "tpu.trace_start"() <{level = 10 : i32, message = "gnd,gkd->gnk"}> : () -> ()
    %cst_57 = arith.constant dense<0.000000e+00> : vector<2x8x1xf32>
    %172 = tpu.matmul %171, %114, %cst_57 {dimension_numbers = #tpu.dot_dimension_numbers<[2], [2], [1], [1], [0, 0, 0, 1, 1, 1], [0], [0]>} : vector<2x8x32xf32>, vector<2x1x32xf32>, vector<2x8x1xf32> -> vector<2x8x1xf32>
    %cst_58 = arith.constant 0.000000e+00 : f32
    "tpu.trace_stop"() : () -> ()
    %173 = vector.broadcast %cst_58 : f32 to vector<2x8x1xf32>
    %174 = arith.cmpf ogt, %3, %173 : vector<2x8x1xf32>
    %cst_59 = arith.constant -1.000000e+30 : f32
    %175 = vector.broadcast %cst_59 : f32 to vector<2x8x1xf32>
    %176 = arith.select %174, %172, %175 : vector<2x8x1xi1>, vector<2x8x1xf32>
    %cst_60 = arith.constant dense<0xFF800000> : vector<2x1xf32>
    %177 = vector.multi_reduction <maximumf>, %176, %cst_60 [1] : vector<2x8x1xf32> to vector<2x1xf32>
    %178 = vector.shape_cast %177 : vector<2x1xf32> to vector<2x1x1xf32>
    %179 = vector.broadcast %178 : vector<2x1x1xf32> to vector<2x8x1xf32>
    %180 = arith.subf %176, %179 : vector<2x8x1xf32>
    %181 = math.exp %180 : vector<2x8x1xf32>
    %cst_61 = arith.constant dense<0.000000e+00> : vector<2x1xf32>
    %182 = vector.multi_reduction <add>, %181, %cst_61 [1] : vector<2x8x1xf32> to vector<2x1xf32>
    %183 = vector.shape_cast %182 : vector<2x1xf32> to vector<2x1x1xf32>
    %184 = tpu.reciprocal %183 {approx = true} : vector<2x1x1xf32> -> vector<2x1x1xf32>
    %185 = vector.broadcast %184 : vector<2x1x1xf32> to vector<2x8x1xf32>
    %186 = arith.mulf %181, %185 : vector<2x8x1xf32>
    %187 = vector.broadcast %186 : vector<2x8x1xf32> to vector<2x8x32xf32>
    %188 = arith.mulf %187, %171 : vector<2x8x32xf32>
    %cst_62 = arith.constant dense<0.000000e+00> : vector<2x32xf32>
    %189 = vector.multi_reduction <add>, %188, %cst_62 [1] : vector<2x8x32xf32> to vector<2x32xf32>
    %190 = vector.shape_cast %189 : vector<2x32xf32> to vector<2x1x32xf32>
    %c0_63 = arith.constant 0 : index
    %c0_64 = arith.constant 0 : index
    %c0_65 = arith.constant 0 : index
    %191 = vector.load %arg12[%c0_63, %c0_64, %c0_65] : memref<2x8x32xf32, #tpu.memory_space<vmem>>, vector<2x8x32xf32>
    tpu.vector_store %arg12[%c0_63, %c0_64, %c0_65], %171 {strides = array<i32>} : memref<2x8x32xf32, #tpu.memory_space<vmem>>, vector<2x8x32xf32>,
    %c0_66 = arith.constant 0 : index
    %c0_67 = arith.constant 0 : index
    %c0_68 = arith.constant 0 : index
    %192 = vector.load %arg13[%c0_66, %c0_67, %c0_68] : memref<2x1x32xf32, #tpu.memory_space<vmem>>, vector<2x1x32xf32>
    tpu.vector_store %arg13[%c0_66, %c0_67, %c0_68], %190 {strides = array<i32>} : memref<2x1x32xf32, #tpu.memory_space<vmem>>, vector<2x1x32xf32>,
    return
  }
  func.func @transform_0(%arg0: i32) -> (i32, i32, i32) {
    %c0_i32 = arith.constant 0 : i32
    %c0_i32_0 = arith.constant 0 : i32
    %c0_i32_1 = arith.constant 0 : i32
    return %arg0, %c0_i32, %c0_i32_0 : i32, i32, i32
  }
  func.func @transform_1(%arg0: i32) -> (i32, i32, i32) {
    %c0_i32 = arith.constant 0 : i32
    %c0_i32_0 = arith.constant 0 : i32
    %c0_i32_1 = arith.constant 0 : i32
    return %arg0, %c0_i32, %c0_i32_0 : i32, i32, i32
  }
  func.func @transform_2(%arg0: i32) -> (i32, i32, i32) {
    %c0_i32 = arith.constant 0 : i32
    %c0_i32_0 = arith.constant 0 : i32
    %c0_i32_1 = arith.constant 0 : i32
    return %arg0, %c0_i32, %c0_i32_0 : i32, i32, i32
  }
  func.func @transform_3(%arg0: i32) -> (i32, i32, i32) {
    %c0_i32 = arith.constant 0 : i32
    %c0_i32_0 = arith.constant 0 : i32
    %c0_i32_1 = arith.constant 0 : i32
    return %arg0, %c0_i32, %c0_i32_0 : i32, i32, i32
  }
  func.func @transform_4(%arg0: i32) -> (i32, i32) {
    %c0_i32 = arith.constant 0 : i32
    %c0_i32_0 = arith.constant 0 : i32
    %c0_i32_1 = arith.constant 0 : i32
    return %c0_i32, %c0_i32_0 : i32, i32
  }
  func.func @transform_5(%arg0: i32) -> (i32, i32) {
    %c0_i32 = arith.constant 0 : i32
    %c0_i32_0 = arith.constant 0 : i32
    %c0_i32_1 = arith.constant 0 : i32
    return %c0_i32, %c0_i32_0 : i32, i32
  }
  func.func @transform_6(%arg0: i32) -> (i32, i32) {
    %c0_i32 = arith.constant 0 : i32
    %c0_i32_0 = arith.constant 0 : i32
    %c0_i32_1 = arith.constant 0 : i32
    return %c0_i32, %c0_i32_0 : i32, i32
  }
  func.func @transform_7(%arg0: i32) -> (i32, i32) {
    %c0_i32 = arith.constant 0 : i32
    %c0_i32_0 = arith.constant 0 : i32
    %c0_i32_1 = arith.constant 0 : i32
    return %c0_i32, %c0_i32_0 : i32, i32
  }
  func.func @transform_8(%arg0: i32) -> (i32, i32) {
    %c0_i32 = arith.constant 0 : i32
    %c0_i32_0 = arith.constant 0 : i32
    %c0_i32_1 = arith.constant 0 : i32
    return %c0_i32, %c0_i32_0 : i32, i32
  }
  func.func @transform_9(%arg0: i32) -> (i32, i32) {
    %c0_i32 = arith.constant 0 : i32
    %c0_i32_0 = arith.constant 0 : i32
    %c0_i32_1 = arith.constant 0 : i32
    return %c0_i32, %c0_i32_0 : i32, i32
  }
  func.func @transform_10(%arg0: i32) -> (i32, i32) {
    %c0_i32 = arith.constant 0 : i32
    %c0_i32_0 = arith.constant 0 : i32
    %c0_i32_1 = arith.constant 0 : i32
    return %c0_i32, %c0_i32_0 : i32, i32
  }
  func.func @transform_11(%arg0: i32) -> (i32, i32, i32) {
    %c0_i32 = arith.constant 0 : i32
    %c0_i32_0 = arith.constant 0 : i32
    %c0_i32_1 = arith.constant 0 : i32
    return %arg0, %c0_i32, %c0_i32_0 : i32, i32, i32
  }
  func.func @transform_12(%arg0: i32) -> (i32, i32, i32) {
    %c0_i32 = arith.constant 0 : i32
    %c0_i32_0 = arith.constant 0 : i32
    %c0_i32_1 = arith.constant 0 : i32
    return %arg0, %c0_i32, %c0_i32_0 : i32, i32, i32
  }
}

</mosaic_0001>

<bundles_post_ra>
// kernel: tpu_custom_call.1
= control target key start
LH: loop header
LB: loop body
LE: loop exit
PB: predicated region body
PF: predicated region fallthrough
CT: control target
= control target key end

     0   :  { %18 = vsyncpa [#allocation3], 0  ;;  %s2246_s0 = inlined_call_operand.vmem [shape: f32[2,8,32], index: 0, kind: input, shape index: {}]   ;;  %s2247_s1 = inlined_call_operand.hbm [shape: bf16[2,8,8], index: 1, kind: input, shape index: {}]   ;;  %s2248_s2 = inlined_call_operand.hbm [shape: bf16[2,8,8], index: 2, kind: input, shape index: {}]   ;;  %s2249_s3 = inlined_call_operand.vmem [shape: f32[2,8,1], index: 3, kind: input, shape index: {}]   ;;  %s2250_s4 = inlined_call_operand.vmem [shape: bf16[32,96], index: 4, kind: input, shape index: {}]   ;;  %s2251_s5 = inlined_call_operand.hbm [shape: bf16[32,96], index: 5, kind: input, shape index: {}]   ;;  %s2252_s6 = inlined_call_operand.hbm [shape: bf16[32,96], index: 6, kind: input, shape index: {}]   ;;  %s2253_s7 = inlined_call_operand.vmem [shape: f32[1,96], index: 7, kind: input, shape index: {}]   ;;  %s2254_s8 = inlined_call_operand.vmem [shape: f32[1,96], index: 8, kind: input, shape index: {}]   ;;  %s2255_s9 = inlined_call_operand.vmem [shape: f32[1,96], index: 9, kind: input, shape index: {}]   ;;  %s2256_s10 = inlined_call_operand.vmem [shape: f32[1,96], index: 10, kind: input, shape index: {}]   ;;  %s2257_s11 = inlined_call_operand.hbm [shape: f32[2,8,32], index: 11, kind: output, shape index: {0}]   ;;  %s2258_s12 = inlined_call_operand.hbm [shape: f32[2,1,32], index: 12, kind: output, shape index: {1}]  }
   0x1   :  { %19 = vsyncpa [#allocation6], 0 }
   0x2   :  { %20 = vsyncpa [#allocation9], 0 }
   0x3   :  { %21 = vsyncpa [#allocation4], 0 }
   0x4   :  { %22 = vsyncpa [#allocation12], 0  ;;  %s1765_s21 = smov [#allocation5]   ;;  %s1766_s23 = smov [#allocation2]  }
   0x5   :  { %s42_s22 = sshll.u32 %s1765_s21, 4  ;;  %s30_s24 = sshll.u32 %s1766_s23, 4  ;;  %s43_s22 = int_to_ptr.vmem [resolvable:$true] %s42_s22  ;;  %s1847_s24 = int_to_ptr.vmem [resolvable:$true] %s30_s24 }
   0x6   :  { %s1623_s27 = scalar_lea.hbm %s2248_s2, 128 }
   0x7   :  { %p1624_p0 = scmp.ne.s32.totalorder %s2248_s2, %s1623_s27  ;;  %p1627_p1 = scmp.lt.u32.totalorder %s1623_s27, %s2248_s2 }
   0x9   :  { %p1629_p2 = pnand %p1627_p1, %p1624_p0 }
   0xb   :  { %1632 = shalt.err (!%p1629_p2)
}
   0xc   :  { %s1633_s14 = scalar_lea.vmem %s43_s22, 128  ;;  %p1638_p4 = scmp.lt.s32.totalorder %s43_s22, %s43_s22 }
   0xd   :  { %p1634_p3 = scmp.ne.s32.totalorder %s43_s22, %s1633_s14  ;;  %p1639_p5 = scmp.lt.s32.totalorder %s1633_s14, %s1633_s14 }
   0xf   :  { %p1640_p6 = por %p1639_p5, %p1638_p4 }
  0x11   :  { %p1641_p7 = pnand %p1640_p6, %p1634_p3 }
  0x13   :  { %1644 = shalt.err (!%p1641_p7)
}
  0x14   :  { %s1767_s15 = smov 64   ;;  %s1768_s16 = smov 4  }
  0x15   :  { %48 = dma.hbm_to_vmem [thread:$0]  %s2248_s2, 128, %s43_s22, [#allocation6], %s1767_s15, %s1767_s15, %s1768_s16  }
  0x16   :  { %s1645_s21 = scalar_lea.hbm %s2247_s1, 128 }
  0x17   :  { %p1646_p8 = scmp.ne.s32.totalorder %s2247_s1, %s1645_s21  ;;  %p1649_p9 = scmp.lt.u32.totalorder %s1645_s21, %s2247_s1 }
  0x19   :  { %p1651_p10 = pnand %p1649_p9, %p1646_p8 }
  0x1b   :  { %1654 = shalt.err (!%p1651_p10)
}
  0x1c   :  { %s1655_s28 = scalar_lea.vmem %s1847_s24, 128  ;;  %p1660_p12 = scmp.lt.s32.totalorder %s1847_s24, %s1847_s24 }
  0x1d   :  { %p1656_p11 = scmp.ne.s32.totalorder %s1847_s24, %s1655_s28  ;;  %p1661_p13 = scmp.lt.s32.totalorder %s1655_s28, %s1655_s28 }
  0x1f   :  { %p1662_p0 = por %p1661_p13, %p1660_p12 }
  0x21   :  { %p1663_p1 = pnand %p1662_p0, %p1656_p11 }
  0x23   :  { %1666 = shalt.err (!%p1663_p1)
}
  0x24   :  { %36 = dma.hbm_to_vmem [thread:$0]  %s2247_s1, 128, %s1847_s24, [#allocation3], %s1767_s15, %s1767_s15, %s1768_s16  }
  0x25   :  { %s1769_s29 = smov [#allocation7]   ;;  %s1770_s13 = smov [#allocation8]  }
  0x26   :  { %s58_s30 = sshll.u32 %s1769_s29, 4  ;;  %s70_s14 = sshll.u32 %s1770_s13, 4  ;;  %s59_s30 = int_to_ptr.vmem [resolvable:$true] %s58_s30  ;;  %s1884_s14 = int_to_ptr.vmem [resolvable:$true] %s70_s14 }
  0x27   :  { %s1667_s19 = scalar_lea.hbm %s2251_s5, 256 }
  0x28   :  { %p1668_p2 = scmp.ne.s32.totalorder %s2251_s5, %s1667_s19  ;;  %p1671_p3 = scmp.lt.u32.totalorder %s1667_s19, %s2251_s5 }
  0x2a   :  { %p1673_p4 = pnand %p1671_p3, %p1668_p2 }
  0x2c   :  { %1676 = shalt.err (!%p1673_p4)
}
  0x2d   :  { %s1677_s1 = scalar_lea.vmem %s59_s30, 256  ;;  %p1682_p6 = scmp.lt.s32.totalorder %s59_s30, %s59_s30 }
  0x2e   :  { %p1678_p5 = scmp.ne.s32.totalorder %s59_s30, %s1677_s1  ;;  %p1683_p7 = scmp.lt.s32.totalorder %s1677_s1, %s1677_s1 }
  0x30   :  { %p1684_p8 = por %p1683_p7, %p1682_p6 }
  0x32   :  { %p1685_p9 = pnand %p1684_p8, %p1678_p5 }
  0x34   :  { %1688 = shalt.err (!%p1685_p9)
}
  0x35   :  { %64 = dma.hbm_to_vmem [thread:$0]  %s2251_s5, 256, %s59_s30, [#allocation6], %s1767_s15, %s1767_s15, %s1768_s16  }
  0x36   :  { %s1689_s2 = scalar_lea.hbm %s2252_s6, 256 }
  0x37   :  { %p1690_p10 = scmp.ne.s32.totalorder %s2252_s6, %s1689_s2  ;;  %p1693_p11 = scmp.lt.u32.totalorder %s1689_s2, %s2252_s6 }
  0x39   :  { %p1695_p12 = pnand %p1693_p11, %p1690_p10 }
  0x3b   :  { %1698 = shalt.err (!%p1695_p12)
}
  0x3c   :  { %s1699_s18 = scalar_lea.vmem %s1884_s14, 256  ;;  %p1704_p0 = scmp.lt.s32.totalorder %s1884_s14, %s1884_s14 }
  0x3d   :  { %p1700_p13 = scmp.ne.s32.totalorder %s1884_s14, %s1699_s18  ;;  %p1705_p1 = scmp.lt.s32.totalorder %s1699_s18, %s1699_s18 }
  0x3f   :  { %p1706_p2 = por %p1705_p1, %p1704_p0 }
  0x41   :  { %p1707_p3 = pnand %p1706_p2, %p1700_p13 }
  0x43   :  { %1710 = shalt.err (!%p1707_p3)
}
  0x44   :  { %76 = dma.hbm_to_vmem [thread:$0]  %s2252_s6, 256, %s1884_s14, [#allocation9], %s1767_s15, %s1767_s15, %s1768_s16  }
  0x45   :  { %1755 = dma.done.wait [#allocation3], 128  }
  0x46   :  { %1756 = vsyncadd [#allocation3], 4294967168 }
  0x47   :  { %1757 = dma.done.wait [#allocation6], 384  }
  0x48   :  { %1758 = vsyncadd [#allocation6], 4294966912 }
  0x49   :  { %1759 = dma.done.wait [#allocation9], 256  }
  0x4a   :  { %1760 = vsyncadd [#allocation9], 4294967040  ;;  %v1771_v0 = vmov 0.0   ;;  %vm1772_vm0 = vmmov 0   ;;  %v1930_v1 = vld [vmem:[%s2246_s0] sm:$0xff]  ;;  %vm228_vm1 = vcmask 1043456  }
  0x4b   :  { %1442 = vmatprep.subr.bf16.mxu0 %v1771_v0  ;;  %1448 = vmatprep.subr.bf16.mxu1 %v1771_v0  ;;  %v1935_v2 = vld [vmem:[%s2246_s0 + $0x8] sm:$0xff]  ;;  %v223_v3 = vpack.c.bf16 %v1930_v1, %v1930_v1  ;;  %vm124_vm2 = vcmask 64512   ;;  %v1941_v5 = vld [vmem:[#allocation2] sm:$0xf]  ;;  %v1943_v6 = vld [vmem:[#allocation2 + $0x4] sm:$0xf] }
  0x4c   :  { %1444 = vmatprep.mubr.msk.bf16.mxu0 %vm1772_vm0, %v1771_v0  ;;  %1450 = vmatprep.mubr.msk.bf16.mxu1 %vm1772_vm0, %v1771_v0  ;;  %v224_v4 = vpack.c.bf16 %v1935_v2, %v1935_v2  ;;  %v1959_v9 = vld [vmem:[#allocation5] sm:$0xf]  ;;  %v1961_v10 = vld [vmem:[#allocation5 + $0x4] sm:$0xf]  ;;  %v1966_v11 = vld [vmem:[%s2250_s4] sm:$0xff]   ;;  %v122_v16 = vunpack.c.l.bf16 %v1941_v5  ;;  %v123_v18 = vunpack.c.l.bf16 %v1943_v6  ;;  %vm192_vm3 = vcmask 261120  }
  0x4d   :  { %v230_v7 = vsel %vm228_vm1, %v223_v3, 0  ;;  %v1981_v12 = vld [vmem:[%s2250_s4 + $0x8] sm:$0xff]   ;;  %v1985_v13 = vld [vmem:[#allocation7] sm:$0xff]   ;;  %v1989_v14 = vld [vmem:[#allocation7 + $0x8] sm:$0xff]   ;;  %v131_v15 = vunpack.c.l.bf16 %v1959_v9  ;;  %v132_v17 = vunpack.c.l.bf16 %v1961_v10  ;;  %v520_v43 = vpack.c.bf16 %v1935_v2, %v1930_v1  ;;  %s1775_s22 = smov 96   ;;  %s1776_s29 = smov [#allocation10]  }
  0x4e   :  { %v276_v8 = vsel %vm228_vm1, %v224_v4, 0  ;;  %1443 = vmatpush3.bf16.msra.mxu0 %v230_v7  ;;  %v125_v20 = vsel %vm124_vm2, %v122_v16, 0.0  ;;  %v128_v22 = vsel %vm124_vm2, %v123_v18, 0.0  ;;  %v2004_v34 = vld [vmem:[#allocation8] sm:$0xff]   ;;  %v2008_v42 = vld [vmem:[#allocation8 + $0x8] sm:$0xff]   ;;  %vm165_vm4 = vcmask 7168  }
  0x4f   :  { %1449 = vmatpush3.bf16.msra.mxu1 %v276_v8  ;;  %1454 = vmatprep.subr.bf16.mxu0 %v1771_v0  ;;  %v133_v19 = vsel %vm124_vm2, %v131_v15, 0.0  ;;  %v136_v21 = vsel %vm124_vm2, %v132_v17, 0.0  ;;  %v2023_v54 = vld [vmem:[%s2256_s10] ss:$0 sm:$0xff]  ;;  %vm793_vm7 = vcmask 785920   ;;  %s1346_s13 = sshll.u32 %s1776_s29, 4  ;;  %s1347_s13 = int_to_ptr.vmem [resolvable:$true] %s1346_s13 }
  0x50   :  { %1460 = vmatprep.subr.bf16.mxu1 %v1771_v0  ;;  %134 = vadd.xlane.f32.xlu1 %v133_v19  ;;  %v1377_v63 = vld [vmem:[%s2254_s8] ss:$0 sm:$0xff]  ;;  %s1711_s17 = scalar_lea.vmem %s1347_s13, 256  ;;  %p1716_p5 = scmp.lt.s32.totalorder %s1347_s13, %s1347_s13 }
  0x51   :  { %1445 = vmatmul.mubr.msk.bf16.vlgmr.msra.gmra.mrb[0].mxu0 %vm124_vm2, %v1941_v5  ;;  %126 = vadd.xlane.f32.xlu0 %v125_v20  ;;  %v1376_v3 = vld [vmem:[%s2253_s7] ss:$0 sm:$0xff]  ;;  %p1712_p4 = scmp.ne.s32.totalorder %s1347_s13, %s1711_s17  ;;  %p1717_p6 = scmp.lt.s32.totalorder %s1711_s17, %s1711_s17 }
  0x52   :  { %1451 = vmatmul.mubr.msk.bf16.vlgmr.msra.gmra.mrb[0].mxu1 %vm124_vm2, %v1943_v6  ;;  %1455 = vmatpush3.bf16.msra.mxu0 %v230_v7  ;;  %v1378_v19 = vld [vmem:[%s2255_s9] ss:$0 sm:$0xff] }
  0x53   :  { %1461 = vmatpush3.bf16.msra.mxu1 %v276_v8  ;;  %1456 = vmatprep.mubr.msk.bf16.mxu0 %vm1772_vm0, %v1771_v0  ;;  %p1718_p7 = por %p1717_p6, %p1716_p5 }
  0x54   :  { %1462 = vmatprep.mubr.msk.bf16.mxu1 %vm1772_vm0, %v1771_v0  ;;  %1474 = vmatprep.subr.bf16.mxu1 %v1771_v0 }
  0x55   :  { %1466 = vmatprep.subr.bf16.mxu0 %v1771_v0  ;;  %137 = vadd.xlane.f32.xlu1 %v136_v21  ;;  %p1719_p8 = pnand %p1718_p7, %p1712_p4 }
  0x56   :  { %129 = vadd.xlane.f32.xlu0 %v128_v22 }
  0x59   :  { %1457 = vmatmul.mubr.msk.bf16.vlgmr.msra.gmra.mrb[4].mxu0 %vm124_vm2, %v1959_v9 }
  0x5a   :  { %1463 = vmatmul.mubr.msk.bf16.vlgmr.msra.gmra.mrb[4].mxu1 %vm124_vm2, %v1961_v10  ;;  %1470 = vmatprep.mubr.msk.bf16.mxu0 %vm1772_vm0, %v1771_v0 }
  0x5b   :  { %1475 = vmatpush3.bf16.msra.mxu1 %v1966_v11  ;;  %1478 = vmatprep.mubr.msk.bf16.mxu1 %vm1772_vm0, %v1771_v0 }
  0x5c   :  { %1476 = vmatprep.subr.bf16.mxu1 %v1771_v0  ;;  %1467 = vmatpush3.bf16.msra.mxu0 %v1985_v13 }
  0x5d   :  { %1468 = vmatprep.subr.bf16.mxu0 %v1771_v0 }
  0x5f   :  { %1477 = vmatpush3.bf16.msra.mxu1 %v1981_v12 }
  0x60   :  { %1490 = vmatprep.subr.bf16.mxu1 %v1771_v0  ;;  %1469 = vmatpush3.bf16.msra.mxu0 %v1989_v14 }
  0x61   :  { %1482 = vmatprep.subr.bf16.mxu0 %v1771_v0 }
  0xdd   :  { %v135_v61 = vpop.xlane.xlu1 %134 }
  0xde   :  { %v127_v62 = vpop.xlane.xlu0 %126  ;;  %v153_v4 = vmul.f32 %v1377_v63, %v135_v61 }
  0xdf   :  { %v145_v7 = vmul.f32 %v1376_v3, %v127_v62 }
  0xe1   :  { %v155_v16 = vadd.f32 %v153_v4, %v145_v7 }
  0xe2   :  { %v138_v8 = vpop.xlane.xlu1 %137 }
  0xe3   :  { %v130_v15 = vpop.xlane.xlu0 %129  ;;  %v154_v17 = vmul.f32 %v1377_v63, %v138_v8  ;;  %v2038_v21 = vadd.f32 %v1378_v19, %v155_v16 }
  0xe4   :  { %v146_v18 = vmul.f32 %v1376_v3, %v130_v15 }
  0xe6   :  { %v156_v20 = vadd.f32 %v154_v17, %v146_v18 }
 0x124   :  { %v266_v23 = vpop.f32.mrb[0].mxu0 }
 0x125   :  { %v312_v24 = vpop.f32.mrb[0].mxu1  ;;  %v1446_v26 = vpop.f32.mrb[1].mxu0 }
 0x126   :  { %v404_v25 = vpack.c.bf16 %v312_v24, %v266_v23  ;;  %v1452_v27 = vpop.f32.mrb[1].mxu1  ;;  %v269_v28 = vpop.f32.mrb[2].mxu0  ;;  %v2041_v23 = vadd.f32 %v1378_v19, %v156_v20 }
 0x127   :  { %v315_v29 = vpop.f32.mrb[2].mxu1  ;;  %v1447_v30 = vpop.f32.mrb[3].mxu0 }
 0x128   :  { %v1453_v31 = vpop.f32.mrb[3].mxu1  ;;  %1479 = vmatmul.mubr.msk.bf16.vlgmr.msra.gmra.mrb[8].mxu1 %vm192_vm3, %v404_v25 }
 0x129   :  { %1492 = vmatprep.mubr.msk.bf16.mxu1 %vm1772_vm0, %v1771_v0 }
 0x12c   :  { %v355_v32 = vpop.f32.mrb[4].mxu0 }
 0x12d   :  { %v398_v33 = vpop.f32.mrb[4].mxu1  ;;  %v1458_v36 = vpop.f32.mrb[5].mxu0 }
 0x12e   :  { %v405_v35 = vpack.c.bf16 %v398_v33, %v355_v32  ;;  %v1464_v37 = vpop.f32.mrb[5].mxu1  ;;  %v358_v38 = vpop.f32.mrb[6].mxu0 }
 0x12f   :  { %v401_v39 = vpop.f32.mrb[6].mxu1  ;;  %v1459_v40 = vpop.f32.mrb[7].mxu0 }
 0x130   :  { %v1465_v41 = vpop.f32.mrb[7].mxu1  ;;  %1471 = vmatmul.mubr.msk.bf16.vlgmr.msra.gmra.mrb[8].mxu0 %vm192_vm3, %v405_v35  ;;  %v1773_v40 = vmov 0  }
 0x131   :  { %1483 = vmatpush3.bf16.msra.mxu0 %v2004_v34  ;;  %1486 = vmatprep.mubr.msk.bf16.mxu0 %vm1772_vm0, %v1771_v0  ;;  %v2055_v41 = vld [vmem:[%s2249_s3 + $0x8] sm:$0xff] }
 0x132   :  { %1484 = vmatprep.subr.bf16.mxu0 %v1771_v0  ;;  %1556 = vset.pattern.permute.xlu1 %v1773_v40  ;;  %vm740_vm6 = vcmp.gt.f32.partialorder %v2055_v41, 0.0 }
 0x133   :  { %1555 = vset.pattern.permute.xlu0 %v1773_v40 }
 0x135   :  { %1485 = vmatpush3.bf16.msra.mxu0 %v2008_v42 }
 0x136   :  { %1496 = vmatprep.subr.bf16.mxu0 %v1771_v0 }
 0x138   :  { %1487 = vmatmul.mubr.msk.bf16.vlgmr.msra.gmra.mrb[12].mxu0 %vm192_vm3, %v520_v43  ;;  %v173_v43 = vsel %vm165_vm4, %v2055_v41, 0.0 }
 0x139   :  { %1498 = vmatprep.mubr.msk.bf16.mxu0 %vm1772_vm0, %v1771_v0 }
 0x1fb   :  { %v511_v44 = vpop.f32.mrb[8].mxu1 }
 0x1fc   :  { %v1480_v45 = vpop.f32.mrb[9].mxu1 }
 0x1fd   :  { %v514_v46 = vpop.f32.mrb[10].mxu1  ;;  %v174_v45 = vrot.slane %v173_v43, 4 }
 0x1fe   :  { %v1481_v47 = vpop.f32.mrb[11].mxu1 }
 0x203   :  { %v455_v48 = vpop.f32.mrb[8].mxu0 }
 0x204   :  { %v512_v49 = vadd.f32 %v511_v44, %v455_v48  ;;  %v1472_v50 = vpop.f32.mrb[9].mxu0  ;;  %v2062_v44 = vld [vmem:[%s2249_s3] sm:$0xff]  ;;  %v175_v48 = vadd.f32 %v174_v45, %v173_v43  ;;  %s1774_s3 = smov 32  }
 0x205   :  { %v458_v51 = vpop.f32.mrb[10].mxu0  ;;  %vm739_vm5 = vcmp.gt.f32.partialorder %v2062_v44, 0.0 }
 0x206   :  { %v515_v52 = vadd.f32 %v514_v46, %v458_v51  ;;  %v1473_v53 = vpop.f32.mrb[11].mxu0  ;;  %v518_v22 = vadd.f32 %v512_v49, %v2038_v21  ;;  %v166_v46 = vsel %vm165_vm4, %v2062_v44, 0.0  ;;  %v176_v50 = vrot.slane %v175_v48, 2 }
 0x207   :  { %v167_v47 = vrot.slane %v166_v46, 4 }
 0x208   :  { %v519_v25 = vadd.f32 %v515_v52, %v2041_v23  ;;  %v177_v52 = vadd.f32 %v176_v50, %v175_v48 }
 0x209   :  { %v168_v49 = vadd.f32 %v167_v47, %v166_v46 }
 0x20b   :  { %v576_v55 = vpop.f32.mrb[12].mxu0  ;;  %v169_v51 = vrot.slane %v168_v49, 2 }
 0x20c   :  { %v577_v56 = vadd.f32 %v2023_v54, %v576_v55  ;;  %v1488_v57 = vpop.f32.mrb[13].mxu0  ;;  %v178_v55 = vrot.slane %v177_v52, 1 }
 0x20d   :  { %v579_v58 = vpop.f32.mrb[14].mxu0  ;;  %v170_v53 = vadd.f32 %v169_v51, %v168_v49 }
 0x20e   :  { %v580_v59 = vadd.f32 %v2023_v54, %v579_v58  ;;  %599 = vrot.lane.b32.xlu0 %v577_v56, %s1767_s15  ;;  %v1489_v60 = vpop.f32.mrb[15].mxu0  ;;  %v583_v24 = vadd.f32 %v577_v56, %v518_v22 }
 0x20f   :  { %v171_v58 = vrot.slane %v170_v53, 1 }
 0x210   :  { %601 = vrot.lane.b32.xlu1 %v580_v59, %s1767_s15  ;;  %v1393_v26 = vmul.f32 -1.442695, %v583_v24  ;;  %v584_v27 = vadd.f32 %v580_v59, %v519_v25  ;;  %v179_v59 = vadd.f32 %v178_v55, %v177_v52 }
 0x211   :  { %v172_v62 = vadd.f32 %v171_v58, %v170_v53 }
 0x212   :  { %1563 = vpow2.f32 %v1393_v26  ;;  %v1394_v28 = vmul.f32 -1.442695, %v584_v27  ;;  %v208_v63 = vadd.f32 1e-30, %v179_v59 }
 0x213   :  { %v207_v3 = vadd.f32 1e-30, %v172_v62 }
 0x214   :  { %1565 = vpow2.f32 %v1394_v28 }
 0x21c   :  { %v1564_v29 = vpop.eup %1563 }
 0x21d   :  { %v591_v30 = vadd.f32 1.0, %v1564_v29 }
 0x21e   :  { %v1566_v31 = vpop.eup %1565 }
 0x21f   :  { %1567 = vrcp.f32 %v591_v30  ;;  %v592_v32 = vadd.f32 1.0, %v1566_v31 }
 0x221   :  { %1569 = vrcp.f32 %v592_v32 }
 0x229   :  { %v2044_v33 = vpop.eup %1567 }
 0x22b   :  { %v2048_v38 = vpop.eup %1569 }
 0x280   :  { %v600_v35 = vpop.permute.xlu0 %599 }
 0x281   :  { %v605_v36 = vmul.f32 %v2044_v33, %v600_v35 }
 0x282   :  { %v602_v37 = vpop.permute.xlu1 %601 }
 0x283   :  { %609 = vrot.lane.b32.xlu1 %v605_v36, %s1767_s15  ;;  %v606_v39 = vmul.f32 %v2048_v38, %v602_v37 }
 0x287   :  { %611 = vrot.lane.b32.xlu1 %v606_v39, %s1767_s15 }
 0x2f5   :  { %v610_v56 = vpop.permute.xlu1 %609 }
 0x2f6   :  { %v615_v57 = vadd.f32 %v610_v56, %v518_v22 }
 0x2f8   :  { %1571 = vtanh.f32 %v615_v57 }
 0x2f9   :  { %v612_v60 = vpop.permute.xlu1 %611 }
 0x2fa   :  { %v616_v61 = vadd.f32 %v612_v60, %v519_v25 }
 0x2fc   :  { %1573 = vtanh.f32 %v616_v61 }
 0x2fd   :  { %1575 = vrcp.f32 %v208_v63 }
 0x2fe   :  { %1577 = vrcp.f32 %v207_v3 }
 0x302   :  { %v1572_v4 = vpop.eup %1571 }
 0x303   :  { %621 = vrot.lane.b32.xlu0 %v1572_v4, %s1767_s15 }
 0x306   :  { %v1574_v7 = vpop.eup %1573 }
 0x307   :  { %623 = vrot.lane.b32.xlu1 %v1574_v7, %s1767_s15  ;;  %182 = vperm.xlu0 %1555, %v2062_v44   ;;  %v1576_v8 = vpop.eup %1575 }
 0x308   :  { %v1578_v15 = vpop.eup %1577 }
 0x30b   :  { %187 = vperm.xlu1 %1556, %v2055_v41   ;;  %218 = vperm.xlu0 %1555, %v1576_v8  }
 0x30f   :  { %213 = vperm.xlu1 %1556, %v1578_v15  }
 0x375   :  { %v622_v16 = vpop.permute.xlu0 %621 }
 0x376   :  { %v627_v17 = vsub.f32 %v1930_v1, %v622_v16 }
 0x378   :  { %631 = vrot.lane.b32.xlu1 %v627_v17, %s1774_s3 }
 0x379   :  { %v624_v18 = vpop.permute.xlu1 %623 }
 0x37a   :  { %v628_v19 = vsub.f32 %v1935_v2, %v624_v18 }
 0x37c   :  { %633 = vrot.lane.b32.xlu0 %v628_v19, %s1774_s3 }
 0x386   :  { %v183_v20 = vpop.permute.xlu0 %182 }
 0x387   :  { %v190_v22 = vmul.f32 %v183_v20, %v1930_v1 }
 0x389   :  { %v193_v25 = vsel %vm192_vm3, %v190_v22, 0.0 }
 0x38a   :  { %v188_v24 = vpop.permute.xlu1 %187  ;;  %v194_v27 = vrot.slane %v193_v25, 4  ;;  %v219_v43 = vpop.permute.xlu0 %218 }
 0x38b   :  { %v191_v26 = vmul.f32 %v188_v24, %v1935_v2 }
 0x38c   :  { %v195_v29 = vadd.f32 %v194_v27, %v193_v25 }
 0x38d   :  { %v200_v28 = vsel %vm192_vm3, %v191_v26, 0.0 }
 0x38e   :  { %v201_v30 = vrot.slane %v200_v28, 4  ;;  %v196_v31 = vrot.slane %v195_v29, 2  ;;  %v214_v37 = vpop.permute.xlu1 %213 }
 0x390   :  { %v202_v32 = vadd.f32 %v201_v30, %v200_v28  ;;  %v197_v36 = vadd.f32 %v196_v31, %v195_v29 }
 0x392   :  { %v203_v35 = vrot.slane %v202_v32, 2  ;;  %v198_v40 = vrot.slane %v197_v36, 1 }
 0x394   :  { %v204_v39 = vadd.f32 %v203_v35, %v202_v32  ;;  %v199_v46 = vadd.f32 %v198_v40, %v197_v36 }
 0x396   :  { %v205_v1 = vrot.slane %v204_v39, 1  ;;  %v221_v49 = vmul.f32 %v214_v37, %v199_v46 }
 0x398   :  { %v206_v48 = vadd.f32 %v205_v1, %v204_v39 }
 0x39a   :  { %v222_v51 = vmul.f32 %v219_v43, %v206_v48 }
 0x3ea   :  { %v632_v45 = vpop.permute.xlu1 %631 }
 0x3eb   :  { %v637_v47 = vmul.f32 %v2044_v33, %v632_v45 }
 0x3ed   :  { %641 = vrot.lane.b32.xlu1 %v637_v47, %s1774_s3 }
 0x3ee   :  { %v634_v2 = vpop.permute.xlu0 %633 }
 0x3ef   :  { %v638_v50 = vmul.f32 %v2048_v38, %v634_v2 }
 0x3f1   :  { %643 = vrot.lane.b32.xlu0 %v638_v50, %s1774_s3  ;;  %650 = vrot.lane.b32.xlu1 %v221_v49, %s1767_s15 }
 0x3f5   :  { %662 = vrot.lane.b32.xlu0 %v222_v51, %s1767_s15 }
 0x45f   :  { %v642_v52 = vpop.permute.xlu1 %641 }
 0x460   :  { %v647_v53 = vadd.f32 %v1572_v4, %v642_v52 }
 0x463   :  { %v644_v55 = vpop.permute.xlu0 %643  ;;  %v651_v56 = vpop.permute.xlu1 %650 }
 0x464   :  { %v653_v57 = vmul.f32 %v651_v56, %v647_v53  ;;  %v648_v33 = vadd.f32 %v1574_v7, %v644_v55 }
 0x466   :  { %655 = vrot.lane.b32.xlu1 %v653_v57, %s1767_s15 }
 0x467   :  { %v663_v58 = vpop.permute.xlu0 %662 }
 0x468   :  { %v665_v59 = vmul.f32 %v663_v58, %v648_v33 }
 0x46a   :  { %667 = vrot.lane.b32.xlu0 %v665_v59, %s1767_s15 }
 0x4d8   :  { %v656_v38 = vpop.permute.xlu1 %655 }
 0x4d9   :  { %v658_v60 = vsel %vm192_vm3, %v656_v38, 0.0 }
 0x4da   :  { %659 = vadd.xlane.f32.xlu1 %v658_v60 }
 0x4dc   :  { %v668_v61 = vpop.permute.xlu0 %667 }
 0x4dd   :  { %v670_v62 = vsel %vm192_vm3, %v668_v61, 0.0 }
 0x4de   :  { %671 = vadd.xlane.f32.xlu0 %v670_v62 }
 0x567   :  { %v660_v63 = vpop.xlane.xlu1 %659 }
 0x568   :  { %v1395_v3 = vmul.f32 -0.17677669, %v660_v63 }
 0x56a   :  { %v677_v4 = vmul.f32 1.442695, %v1395_v3 }
 0x56b   :  { %v672_v8 = vpop.xlane.xlu0 %671 }
 0x56c   :  { %1579 = vpow2.f32 %v677_v4  ;;  %v1396_v7 = vmul.f32 -0.17677669, %v672_v8 }
 0x56e   :  { %v679_v15 = vmul.f32 1.442695, %v1396_v7 }
 0x570   :  { %1581 = vpow2.f32 %v679_v15 }
 0x576   :  { %v1580_v16 = vpop.eup %1579 }
 0x577   :  { %v681_v17 = vadd.f32 1.0, %v1580_v16 }
 0x579   :  { %1583 = vrcp.f32 %v681_v17 }
 0x57a   :  { %v1582_v18 = vpop.eup %1581 }
 0x57b   :  { %v682_v19 = vadd.f32 1.0, %v1582_v18 }
 0x57d   :  { %1585 = vrcp.f32 %v682_v19 }
 0x583   :  { %v1584_v20 = vpop.eup %1583 }
 0x584   :  { %703 = vperm.xlu0 %1555, %v1584_v20   ;;  %v687_v25 = vsub.f32 1.0, %v1584_v20 }
 0x587   :  { %v1586_v22 = vpop.eup %1585 }
 0x588   :  { %708 = vperm.xlu1 %1556, %v1586_v22   ;;  %v688_v24 = vsub.f32 1.0, %v1586_v22 }
 0x58a   :  { %696 = vperm.xlu0 %1555, %v688_v24  }
 0x58c   :  { %691 = vperm.xlu1 %1556, %v687_v25  }
 0x603   :  { %v704_v26 = vpop.permute.xlu0 %703 }
 0x604   :  { %v711_v27 = vmul.f32 %v704_v26, %v221_v49 }
 0x606   :  { %715 = vrot.lane.b32.xlu1 %v711_v27, %s1767_s15 }
 0x607   :  { %v709_v28 = vpop.permute.xlu1 %708 }
 0x608   :  { %v712_v29 = vmul.f32 %v709_v28, %v222_v51 }
 0x609   :  { %v697_v32 = vpop.permute.xlu0 %696 }
 0x60a   :  { %717 = vrot.lane.b32.xlu0 %v712_v29, %s1767_s15  ;;  %v700_v37 = vmul.f32 %v697_v32, %v648_v33 }
 0x60b   :  { %v692_v30 = vpop.permute.xlu1 %691 }
 0x60c   :  { %v699_v31 = vmul.f32 %v692_v30, %v647_v53 }
 0x678   :  { %v716_v35 = vpop.permute.xlu1 %715 }
 0x679   :  { %v2090_v36 = vadd.f32 %v716_v35, %v699_v31 }
 0x67b   :  { %v808_v39 = vpack.c.bf16 %v2090_v36, %v2090_v36  ;;  %v723_v47 = vmul.f32 %v2090_v36, %v651_v56 }
 0x67c   :  { %v718_v40 = vpop.permute.xlu0 %717 }
 0x67d   :  { %v2094_v43 = vadd.f32 %v718_v40, %v700_v37  ;;  %811 = vrot.lane.b32.xlu1 %v808_v39, %s1767_s15 }
 0x67f   :  { %v809_v45 = vpack.c.bf16 %v2094_v43, %v2094_v43  ;;  %v1074_v1 = vpack.c.bf16 %v2094_v43, %v2090_v36  ;;  %v731_v46 = vmul.f32 %v2094_v43, %v663_v58 }
 0x681   :  { %857 = vrot.lane.b32.xlu0 %v809_v45, %s1767_s15  ;;  %1076 = vrot.lane.b32.xlu1 %v1074_v1, %s1767_s15 }
 0x685   :  { %733 = vrot.lane.b32.xlu1 %v731_v46, %s1767_s15  ;;  %725 = vrot.lane.b32.xlu0 %v723_v47, %s1767_s15 }
 0x6ef   :  { %v812_v2 = vpop.permute.xlu1 %811 }
 0x6f0   :  { %v814_v48 = vsel %vm228_vm1, %v812_v2, 0 }
 0x6f1   :  { %1491 = vmatpush3.bf16.msra.mxu1 %v814_v48 }
 0x6f2   :  { %1502 = vmatprep.subr.bf16.mxu1 %v1771_v0 }
 0x6f3   :  { %v858_v49 = vpop.permute.xlu0 %857  ;;  %v1077_v60 = vpop.permute.xlu1 %1076 }
 0x6f4   :  { %v860_v50 = vsel %vm228_vm1, %v858_v49, 0  ;;  %1493 = vmatmul.mubr.msk.bf16.vlgmr.msra.gmra.mrb[12].mxu1 %vm124_vm2, %v1941_v5 }
 0x6f5   :  { %1497 = vmatpush3.bf16.msra.mxu0 %v860_v50  ;;  %1503 = vmatpush3.bf16.msra.mxu1 %v814_v48 }
 0x6f6   :  { %1508 = vmatprep.subr.bf16.mxu0 %v1771_v0  ;;  %1504 = vmatprep.mubr.msk.bf16.mxu1 %vm1772_vm0, %v1771_v0 }
 0x6f7   :  { %1514 = vmatprep.subr.bf16.mxu1 %v1771_v0  ;;  %v726_v22 = vpop.permute.xlu0 %725  ;;  %v734_v25 = vpop.permute.xlu1 %733 }
 0x6f8   :  { %1499 = vmatmul.mubr.msk.bf16.vlgmr.msra.gmra.mrb[16].mxu0 %vm124_vm2, %v1943_v6  ;;  %v728_v24 = vsel %vm192_vm3, %v726_v22, 0.0  ;;  %v736_v26 = vsel %vm192_vm3, %v734_v25, 0.0 }
 0x6f9   :  { %1509 = vmatpush3.bf16.msra.mxu0 %v860_v50  ;;  %1510 = vmatprep.mubr.msk.bf16.mxu0 %vm1772_vm0, %v1771_v0 }
 0x6fa   :  { %1522 = vmatprep.subr.bf16.mxu0 %v1771_v0 }
 0x6fc   :  { %1505 = vmatmul.mubr.msk.bf16.vlgmr.msra.gmra.mrb[16].mxu1 %vm124_vm2, %v1959_v9 }
 0x6fd   :  { %1515 = vmatpush3.bf16.msra.mxu1 %v1985_v13  ;;  %1518 = vmatprep.mubr.msk.bf16.mxu1 %vm1772_vm0, %v1771_v0 }
 0x6fe   :  { %1516 = vmatprep.subr.bf16.mxu1 %v1771_v0 }
 0x700   :  { %1511 = vmatmul.mubr.msk.bf16.vlgmr.msra.gmra.mrb[20].mxu0 %vm124_vm2, %v1961_v10 }
 0x701   :  { %1523 = vmatpush3.bf16.msra.mxu0 %v1966_v11  ;;  %1526 = vmatprep.mubr.msk.bf16.mxu0 %vm1772_vm0, %v1771_v0 }
 0x702   :  { %1524 = vmatprep.subr.bf16.mxu0 %v1771_v0  ;;  %1517 = vmatpush3.bf16.msra.mxu1 %v1989_v14 }
 0x703   :  { %1530 = vmatprep.subr.bf16.mxu1 %v1771_v0 }
 0x705   :  { %1525 = vmatpush3.bf16.msra.mxu0 %v1981_v12 }
 0x7c7   :  { %v850_v5 = vpop.f32.mrb[12].mxu1 }
 0x7c8   :  { %v1494_v6 = vpop.f32.mrb[13].mxu1 }
 0x7c9   :  { %v853_v9 = vpop.f32.mrb[14].mxu1 }
 0x7ca   :  { %v1495_v13 = vpop.f32.mrb[15].mxu1 }
 0x7cb   :  { %v896_v51 = vpop.f32.mrb[16].mxu0 }
 0x7cc   :  { %v982_v52 = vpack.c.bf16 %v896_v51, %v850_v5  ;;  %v1500_v10 = vpop.f32.mrb[17].mxu0 }
 0x7cd   :  { %v899_v53 = vpop.f32.mrb[18].mxu0 }
 0x7ce   :  { %v1501_v11 = vpop.f32.mrb[19].mxu0  ;;  %1527 = vmatmul.mubr.msk.bf16.vlgmr.msra.gmra.mrb[24].mxu0 %vm192_vm3, %v982_v52 }
 0x7cf   :  { %v936_v55 = vpop.f32.mrb[16].mxu1 }
 0x7d0   :  { %v1506_v56 = vpop.f32.mrb[17].mxu1 }
 0x7d1   :  { %v939_v57 = vpop.f32.mrb[18].mxu1 }
 0x7d2   :  { %v1507_v33 = vpop.f32.mrb[19].mxu1 }
 0x7d3   :  { %v976_v14 = vpop.f32.mrb[20].mxu0 }
 0x7d4   :  { %v983_v58 = vpack.c.bf16 %v976_v14, %v936_v55  ;;  %v1512_v59 = vpop.f32.mrb[21].mxu0 }
 0x7d5   :  { %v979_v38 = vpop.f32.mrb[22].mxu0 }
 0x7d6   :  { %1519 = vmatmul.mubr.msk.bf16.vlgmr.msra.gmra.mrb[20].mxu1 %vm192_vm3, %v983_v58  ;;  %v1513_v12 = vpop.f32.mrb[23].mxu0 }
 0x7d7   :  { %1531 = vmatpush3.bf16.msra.mxu1 %v2004_v34  ;;  %1534 = vmatprep.mubr.msk.bf16.mxu1 %vm1772_vm0, %v1771_v0 }
 0x7d8   :  { %1532 = vmatprep.subr.bf16.mxu1 %v1771_v0 }
 0x7db   :  { %1533 = vmatpush3.bf16.msra.mxu1 %v2008_v42 }
 0x7de   :  { %1535 = vmatmul.mubr.msk.bf16.vlgmr.msra.gmra.mrb[24].mxu1 %vm192_vm3, %v1077_v60 }
 0x8a1   :  { %v1065_v61 = vpop.f32.mrb[24].mxu0 }
 0x8a2   :  { %v1528_v62 = vpop.f32.mrb[25].mxu0 }
 0x8a3   :  { %v1068_v63 = vpop.f32.mrb[26].mxu0 }
 0x8a4   :  { %v1529_v3 = vpop.f32.mrb[27].mxu0 }
 0x8a9   :  { %v1021_v4 = vpop.f32.mrb[20].mxu1 }
 0x8aa   :  { %v1066_v8 = vadd.f32 %v1065_v61, %v1021_v4  ;;  %v1520_v7 = vpop.f32.mrb[21].mxu1 }
 0x8ab   :  { %v1024_v15 = vpop.f32.mrb[22].mxu1 }
 0x8ac   :  { %v1069_v16 = vadd.f32 %v1068_v63, %v1024_v15  ;;  %v1521_v34 = vpop.f32.mrb[23].mxu1  ;;  %v2151_v27 = vadd.f32 %v1066_v8, %v2038_v21 }
 0x8ae   :  { %v2154_v28 = vadd.f32 %v1069_v16, %v2041_v23 }
 0x8b1   :  { %v1115_v17 = vpop.f32.mrb[24].mxu1 }
 0x8b2   :  { %v1116_v18 = vadd.f32 %v2023_v54, %v1115_v17  ;;  %v1536_v19 = vpop.f32.mrb[25].mxu1 }
 0x8b3   :  { %v1118_v0 = vpop.f32.mrb[26].mxu1 }
 0x8b4   :  { %v1119_v42 = vadd.f32 %v2023_v54, %v1118_v0  ;;  %1138 = vrot.lane.b32.xlu0 %v1116_v18, %s1767_s15  ;;  %v1537_v20 = vpop.f32.mrb[27].mxu1  ;;  %v1122_v54 = vadd.f32 %v1116_v18, %v2151_v27 }
 0x8b6   :  { %1140 = vrot.lane.b32.xlu1 %v1119_v42, %s1767_s15  ;;  %v1123_v29 = vadd.f32 %v1119_v42, %v2154_v28  ;;  %v1404_v30 = vmul.f32 -1.442695, %v1122_v54 }
 0x8b8   :  { %v1405_v31 = vmul.f32 -1.442695, %v1123_v29  ;;  %1587 = vpow2.f32 %v1404_v30 }
 0x8ba   :  { %1589 = vpow2.f32 %v1405_v31 }
 0x8c2   :  { %v1588_v32 = vpop.eup %1587 }
 0x8c3   :  { %v1130_v37 = vadd.f32 1.0, %v1588_v32 }
 0x8c4   :  { %v1590_v35 = vpop.eup %1589 }
 0x8c5   :  { %v1131_v39 = vadd.f32 1.0, %v1590_v35  ;;  %1591 = vrcp.f32 %v1130_v37 }
 0x8c7   :  { %1593 = vrcp.f32 %v1131_v39 }
 0x8cf   :  { %v2158_v40 = vpop.eup %1591 }
 0x8d1   :  { %v2161_v45 = vpop.eup %1593 }
 0x8d3   :  { %729 = vadd.xlane.f32.xlu0 %v728_v24 }
 0x8da   :  { %737 = vadd.xlane.f32.xlu1 %v736_v26 }
 0x926   :  { %v1139_v21 = vpop.permute.xlu0 %1138 }
 0x927   :  { %v1144_v23 = vmul.f32 %v2158_v40, %v1139_v21 }
 0x928   :  { %v1141_v1 = vpop.permute.xlu1 %1140 }
 0x929   :  { %v1145_v46 = vmul.f32 %v2161_v45, %v1141_v1  ;;  %1148 = vrot.lane.b32.xlu0 %v1144_v23, %s1767_s15 }
 0x92b   :  { %1150 = vrot.lane.b32.xlu1 %v1145_v46, %s1767_s15 }
 0x960   :  { %v730_v47 = vpop.xlane.xlu0 %729 }
 0x961   :  { %v741_v2 = vsel %vm739_vm5, %v730_v47, -1e+30 }
 0x962   :  { %v743_v48 = vsel %vm165_vm4, %v741_v2, -inf }
 0x963   :  { %v744_v49 = vrot.slane %v743_v48, 4 }
 0x965   :  { %v745_v50 = vmax.f32 %v743_v48, %v744_v49 }
 0x967   :  { %v746_v5 = vrot.slane %v745_v50, 2  ;;  %v738_v6 = vpop.xlane.xlu1 %737 }
 0x968   :  { %v742_v9 = vsel %vm740_vm6, %v738_v6, -1e+30 }
 0x969   :  { %v747_v13 = vmax.f32 %v745_v50, %v746_v5  ;;  %v750_v51 = vsel %vm165_vm4, %v742_v9, -inf }
 0x96a   :  { %v751_v52 = vrot.slane %v750_v51, 4 }
 0x96b   :  { %v748_v10 = vrot.slane %v747_v13, 1 }
 0x96c   :  { %v752_v53 = vmax.f32 %v750_v51, %v751_v52 }
 0x96d   :  { %v749_v11 = vmax.f32 %v747_v13, %v748_v10 }
 0x96e   :  { %v753_v55 = vrot.slane %v752_v53, 2 }
 0x96f   :  { %v757_v56 = vsub.f32 %v741_v2, %v749_v11 }
 0x970   :  { %v754_v57 = vmax.f32 %v752_v53, %v753_v55 }
 0x971   :  { %v759_v14 = vmul.f32 1.442695, %v757_v56 }
 0x972   :  { %v755_v33 = vrot.slane %v754_v57, 1 }
 0x973   :  { %1595 = vpow2.f32 %v759_v14 }
 0x974   :  { %v756_v58 = vmax.f32 %v754_v57, %v755_v33 }
 0x976   :  { %v758_v59 = vsub.f32 %v742_v9, %v756_v58 }
 0x978   :  { %v761_v38 = vmul.f32 1.442695, %v758_v59 }
 0x97a   :  { %1597 = vpow2.f32 %v761_v38 }
 0x97d   :  { %v1596_v12 = vpop.eup %1595 }
 0x97e   :  { %v763_v61 = vsel %vm165_vm4, %v1596_v12, 0.0 }
 0x97f   :  { %v764_v62 = vrot.slane %v763_v61, 4 }
 0x981   :  { %v765_v4 = vadd.f32 %v764_v62, %v763_v61 }
 0x983   :  { %v766_v7 = vrot.slane %v765_v4, 2 }
 0x984   :  { %v1598_v60 = vpop.eup %1597 }
 0x985   :  { %v770_v63 = vsel %vm165_vm4, %v1598_v60, 0.0  ;;  %v767_v16 = vadd.f32 %v766_v7, %v765_v4 }
 0x986   :  { %v771_v3 = vrot.slane %v770_v63, 4 }
 0x987   :  { %v768_v17 = vrot.slane %v767_v16, 1 }
 0x988   :  { %v772_v8 = vadd.f32 %v771_v3, %v770_v63 }
 0x989   :  { %v769_v0 = vadd.f32 %v768_v17, %v767_v16 }
 0x98a   :  { %v773_v15 = vrot.slane %v772_v8, 2 }
 0x98c   :  { %v774_v34 = vadd.f32 %v773_v15, %v772_v8 }
 0x98e   :  { %v775_v18 = vrot.slane %v774_v34, 1 }
 0x990   :  { %v776_v24 = vadd.f32 %v775_v18, %v774_v34 }
 0x99b   :  { %v1149_v19 = vpop.permute.xlu0 %1148 }
 0x99c   :  { %v1154_v42 = vadd.f32 %v1149_v19, %v2151_v27 }
 0x99d   :  { %v1151_v20 = vpop.permute.xlu1 %1150 }
 0x99e   :  { %1599 = vtanh.f32 %v1154_v42  ;;  %v1155_v22 = vadd.f32 %v1151_v20, %v2154_v28 }
 0x99f   :  { %1601 = vrcp.f32 %v769_v0 }
 0x9a0   :  { %1603 = vtanh.f32 %v1155_v22 }
 0x9a1   :  { %1605 = vrcp.f32 %v776_v24 }
 0x9a8   :  { %v1600_v25 = vpop.eup %1599 }
 0x9a9   :  { %v1602_v26 = vpop.eup %1601  ;;  %v1158_v54 = vsub.f32 %v2090_v36, %v1600_v25 }
 0x9aa   :  { %v1604_v29 = vpop.eup %1603  ;;  %v779_v27 = vmul.f32 %v1602_v26, %v1596_v12 }
 0x9ab   :  { %1162 = vrot.lane.b32.xlu0 %v1158_v54, %s1775_s22  ;;  %v1159_v30 = vsub.f32 %v2094_v43, %v1604_v29  ;;  %v1606_v31 = vpop.eup %1605 }
 0x9ac   :  { %v780_v32 = vmul.f32 %v1606_v31, %v1598_v60 }
 0x9ad   :  { %1164 = vrot.lane.b32.xlu1 %v1159_v30, %s1775_s22 }
 0x9af   :  { %783 = vperm.xlu0 %1555, %v779_v27  }
 0x9b1   :  { %788 = vperm.xlu1 %1556, %v780_v32  }
 0xa1d   :  { %v1163_v28 = vpop.permute.xlu0 %1162 }
 0xa1e   :  { %v1168_v35 = vmul.f32 %v2158_v40, %v1163_v28 }
 0xa1f   :  { %v1165_v37 = vpop.permute.xlu1 %1164 }
 0xa20   :  { %v1169_v39 = vmul.f32 %v2161_v45, %v1165_v37  ;;  %1172 = vrot.lane.b32.xlu0 %v1168_v35, %s1774_s3 }
 0xa22   :  { %1174 = vrot.lane.b32.xlu1 %v1169_v39, %s1774_s3 }
 0xa2e   :  { %v784_v21 = vpop.permute.xlu0 %783 }
 0xa2f   :  { %v791_v1 = vmul.f32 %v784_v21, %v2090_v36 }
 0xa30   :  { %v789_v23 = vpop.permute.xlu1 %788 }
 0xa31   :  { %v792_v46 = vmul.f32 %v789_v23, %v2094_v43  ;;  %v794_v47 = vsel %vm793_vm7, %v791_v1, 0.0 }
 0xa32   :  { %v795_v48 = vrot.slane %v794_v47, 4 }
 0xa33   :  { %v801_v2 = vsel %vm793_vm7, %v792_v46, 0.0 }
 0xa34   :  { %v802_v40 = vrot.slane %v801_v2, 4  ;;  %v796_v49 = vadd.f32 %v795_v48, %v794_v47 }
 0xa36   :  { %v803_v50 = vadd.f32 %v802_v40, %v801_v2  ;;  %v797_v45 = vrot.slane %v796_v49, 2 }
 0xa38   :  { %v804_v5 = vrot.slane %v803_v50, 2  ;;  %v798_v6 = vadd.f32 %v797_v45, %v796_v49 }
 0xa3a   :  { %v805_v9 = vadd.f32 %v804_v5, %v803_v50  ;;  %v799_v13 = vrot.slane %v798_v6, 1 }
 0xa3c   :  { %v806_v51 = vrot.slane %v805_v9, 1  ;;  %v800_v36 = vadd.f32 %v799_v13, %v798_v6 }
 0xa3e   :  { %v807_v55 = vadd.f32 %v806_v51, %v805_v9 }
 0xa92   :  { %v1173_v52 = vpop.permute.xlu0 %1172 }
 0xa93   :  { %v1178_v10 = vadd.f32 %v1600_v25, %v1173_v52 }
 0xa94   :  { %v1175_v53 = vpop.permute.xlu1 %1174 }
 0xa95   :  { %v1179_v11 = vadd.f32 %v1604_v29, %v1175_v53  ;;  %v1180_v43 = vmul.f32 %v1178_v10, %v800_v36 }
 0xa97   :  { %1182 = vrot.lane.b32.xlu0 %v1180_v43, %s1767_s15  ;;  %v1188_v56 = vmul.f32 %v1179_v11, %v807_v55 }
 0xa99   :  { %1190 = vrot.lane.b32.xlu1 %v1188_v56, %s1767_s15 }
 0xb09   :  { %v1183_v57 = vpop.permute.xlu0 %1182 }
 0xb0a   :  { %v1185_v33 = vsel %vm192_vm3, %v1183_v57, 0.0 }
 0xb0b   :  { %1186 = vadd.xlane.f32.xlu0 %v1185_v33  ;;  %v1191_v14 = vpop.permute.xlu1 %1190 }
 0xb0c   :  { %v1193_v58 = vsel %vm192_vm3, %v1191_v14, 0.0 }
 0xb0d   :  { %1194 = vadd.xlane.f32.xlu1 %v1193_v58 }
 0xb98   :  { %v1187_v59 = vpop.xlane.xlu0 %1186 }
 0xb99   :  { %v1406_v38 = vmul.f32 -0.17677669, %v1187_v59 }
 0xb9a   :  { %v1195_v12 = vpop.xlane.xlu1 %1194 }
 0xb9b   :  { %v1200_v60 = vmul.f32 1.442695, %v1406_v38  ;;  %v1407_v61 = vmul.f32 -0.17677669, %v1195_v12 }
 0xb9d   :  { %1607 = vpow2.f32 %v1200_v60  ;;  %v1202_v62 = vmul.f32 1.442695, %v1407_v61 }
 0xb9f   :  { %1609 = vpow2.f32 %v1202_v62 }
 0xba7   :  { %v1608_v63 = vpop.eup %1607 }
 0xba8   :  { %v1204_v3 = vadd.f32 1.0, %v1608_v63 }
 0xba9   :  { %v1610_v4 = vpop.eup %1609 }
 0xbaa   :  { %1611 = vrcp.f32 %v1204_v3  ;;  %v1205_v8 = vadd.f32 1.0, %v1610_v4 }
 0xbac   :  { %1613 = vrcp.f32 %v1205_v8 }
 0xbb4   :  { %v1612_v7 = vpop.eup %1611 }
 0xbb5   :  { %v1210_v15 = vsub.f32 1.0, %v1612_v7 }
 0xbb6   :  { %v1614_v16 = vpop.eup %1613 }
 0xbb7   :  { %1214 = vperm.xlu0 %1555, %v1210_v15   ;;  %v1211_v34 = vsub.f32 1.0, %v1614_v16 }
 0xbb9   :  { %1219 = vperm.xlu1 %1556, %v1211_v34  }
 0xbbb   :  { %1226 = vperm.xlu0 %1555, %v1612_v7  }
 0xbbd   :  { %1231 = vperm.xlu1 %1556, %v1614_v16  }
 0xc36   :  { %v1215_v17 = vpop.permute.xlu0 %1214 }
 0xc37   :  { %v1222_v0 = vmul.f32 %v1215_v17, %v1178_v10 }
 0xc38   :  { %v1220_v18 = vpop.permute.xlu1 %1219 }
 0xc39   :  { %v1223_v22 = vmul.f32 %v1220_v18, %v1179_v11 }
 0xc3a   :  { %v1227_v19 = vpop.permute.xlu0 %1226 }
 0xc3b   :  { %v1234_v42 = vmul.f32 %v1227_v19, %v800_v36 }
 0xc3c   :  { %v1232_v20 = vpop.permute.xlu1 %1231 }
 0xc3d   :  { %v2192_v24 = vadd.f32 %v1234_v42, %v1222_v0  ;;  %v1235_v25 = vmul.f32 %v1232_v20, %v807_v55 }
 0xc3f   :  { %v2194_v26 = vadd.f32 %v1235_v25, %v1223_v22  ;;  %v1238_v54 = vmul.f32 %v2192_v24, %v800_v36 }
 0xc41   :  { %1240 = vrot.lane.b32.xlu0 %v1238_v54, %s1767_s15  ;;  %v1246_v29 = vmul.f32 %v2194_v26, %v807_v55 }
 0xc43   :  { %1248 = vrot.lane.b32.xlu1 %v1246_v29, %s1767_s15 }
 0xcb3   :  { %v1241_v30 = vpop.permute.xlu0 %1240 }
 0xcb4   :  { %v1243_v31 = vsel %vm192_vm3, %v1241_v30, 0.0 }
 0xcb5   :  { %1244 = vadd.xlane.f32.xlu0 %v1243_v31  ;;  %v1249_v27 = vpop.permute.xlu1 %1248 }
 0xcb6   :  { %v1251_v32 = vsel %vm192_vm3, %v1249_v27, 0.0 }
 0xcb7   :  { %1252 = vadd.xlane.f32.xlu1 %v1251_v32 }
 0xd42   :  { %v1245_v28 = vpop.xlane.xlu0 %1244 }
 0xd43   :  { %v1254_v35 = vsel %vm739_vm5, %v1245_v28, -1e+30 }
 0xd44   :  { %v1256_v37 = vsel %vm165_vm4, %v1254_v35, -inf  ;;  %v1253_v39 = vpop.xlane.xlu1 %1252 }
 0xd45   :  { %v1257_v21 = vrot.slane %v1256_v37, 4  ;;  %v1255_v23 = vsel %vm740_vm6, %v1253_v39, -1e+30 }
 0xd46   :  { %v1263_v1 = vsel %vm165_vm4, %v1255_v23, -inf }
 0xd47   :  { %v1258_v46 = vmax.f32 %v1256_v37, %v1257_v21  ;;  %v1264_v47 = vrot.slane %v1263_v1, 4 }
 0xd49   :  { %v1259_v2 = vrot.slane %v1258_v46, 2  ;;  %v1265_v48 = vmax.f32 %v1263_v1, %v1264_v47 }
 0xd4b   :  { %v1260_v40 = vmax.f32 %v1258_v46, %v1259_v2  ;;  %v1266_v49 = vrot.slane %v1265_v48, 2 }
 0xd4d   :  { %v1261_v50 = vrot.slane %v1260_v40, 1  ;;  %v1267_v45 = vmax.f32 %v1265_v48, %v1266_v49 }
 0xd4f   :  { %v1262_v5 = vmax.f32 %v1260_v40, %v1261_v50  ;;  %v1268_v44 = vrot.slane %v1267_v45, 1 }
 0xd51   :  { %v1270_v6 = vsub.f32 %v1254_v35, %v1262_v5  ;;  %v1269_v9 = vmax.f32 %v1267_v45, %v1268_v44 }
 0xd53   :  { %v1272_v13 = vmul.f32 1.442695, %v1270_v6  ;;  %v1271_v51 = vsub.f32 %v1255_v23, %v1269_v9 }
 0xd55   :  { %1615 = vpow2.f32 %v1272_v13  ;;  %v1274_v52 = vmul.f32 1.442695, %v1271_v51 }
 0xd57   :  { %1617 = vpow2.f32 %v1274_v52 }
 0xd5f   :  { %v1616_v41 = vpop.eup %1615 }
 0xd60   :  { %v1276_v10 = vsel %vm165_vm4, %v1616_v41, 0.0 }
 0xd61   :  { %v1618_v36 = vpop.eup %1617  ;;  %v1277_v53 = vrot.slane %v1276_v10, 4 }
 0xd62   :  { %v1283_v11 = vsel %vm165_vm4, %v1618_v36, 0.0 }
 0xd63   :  { %v1278_v43 = vadd.f32 %v1277_v53, %v1276_v10  ;;  %v1284_v55 = vrot.slane %v1283_v11, 4 }
 0xd65   :  { %v1279_v56 = vrot.slane %v1278_v43, 2  ;;  %v1285_v57 = vadd.f32 %v1284_v55, %v1283_v11 }
 0xd67   :  { %v1280_v33 = vadd.f32 %v1279_v56, %v1278_v43  ;;  %v1286_v14 = vrot.slane %v1285_v57, 2 }
 0xd69   :  { %v1287_v58 = vadd.f32 %v1286_v14, %v1285_v57  ;;  %v1281_v59 = vrot.slane %v1280_v33, 1 }
 0xd6b   :  { %v1282_v38 = vadd.f32 %v1281_v59, %v1280_v33  ;;  %v1288_v12 = vrot.slane %v1287_v58, 1 }
 0xd6d   :  { %1619 = vrcp.f32 %v1282_v38  ;;  %v1289_v60 = vadd.f32 %v1288_v12, %v1287_v58 }
 0xd6f   :  { %1621 = vrcp.f32 %v1289_v60 }
 0xd77   :  { %v1620_v61 = vpop.eup %1619 }
 0xd78   :  { %v1292_v62 = vmul.f32 %v1620_v61, %v1616_v41 }
 0xd79   :  { %v1622_v63 = vpop.eup %1621 }
 0xd7a   :  { %1296 = vperm.xlu0 %1555, %v1292_v62   ;;  %v1293_v3 = vmul.f32 %v1622_v63, %v1618_v36 }
 0xd7c   :  { %1301 = vperm.xlu1 %1556, %v1293_v3  }
 0xd7e   :  { %1322 = vrot.lane.b32.xlu0 %v2192_v24, %s1767_s15 }
 0xd80   :  { %1324 = vrot.lane.b32.xlu1 %v2194_v26, %s1767_s15 }
 0xdf9   :  { %v1297_v4 = vpop.permute.xlu0 %1296 }
 0xdfa   :  { %v1304_v8 = vmul.f32 %v1297_v4, %v2192_v24 }
 0xdfb   :  { %v1302_v7 = vpop.permute.xlu1 %1301 }
 0xdfc   :  { %v1306_v15 = vsel %vm793_vm7, %v1304_v8, 0.0  ;;  %v1305_v16 = vmul.f32 %v1302_v7, %v2194_v26 }
 0xdfd   :  { %v1307_v34 = vrot.slane %v1306_v15, 4  ;;  %v1323_v17 = vpop.permute.xlu0 %1322 }
 0xdfe   :  { %v1313_v18 = vsel %vm793_vm7, %v1305_v16, 0.0  ;;  %1328 = vst.msk [vmem:[#allocation10] sm:$0xff] %vm192_vm3, %v1323_v17 }
 0xdff   :  { %v1308_v19 = vadd.f32 %v1307_v34, %v1306_v15  ;;  %v1314_v0 = vrot.slane %v1313_v18, 4  ;;  %v1325_v42 = vpop.permute.xlu1 %1324 }
 0xe00   :  { %1329 = vst.msk [vmem:[#allocation10 + $0x8] sm:$0xff] %vm192_vm3, %v1325_v42 }
 0xe01   :  { %v1315_v20 = vadd.f32 %v1314_v0, %v1313_v18  ;;  %v1309_v22 = vrot.slane %v1308_v19, 2 }
 0xe02   :  { %1722 = shalt.err (!%p1719_p8)
}
 0xe03   :  { %s1723_s30 = scalar_lea.hbm %s2257_s11, 256 }
 0xe04   :  { %p1724_p9 = scmp.ne.s32.totalorder %s2257_s11, %s1723_s30  ;;  %p1727_p10 = scmp.lt.u32.totalorder %s1723_s30, %s2257_s11 }
 0xe06   :  { %p1729_p11 = pnand %p1727_p10, %p1724_p9 }
 0xe08   :  { %1732 = shalt.err (!%p1729_p11)
}
 0xe09   :  { %s1777_s0 = smov 128   ;;  %s1778_s20 = smov 8   ;;  %v1310_v24 = vadd.f32 %v1309_v22, %v1308_v19  ;;  %v1316_v25 = vrot.slane %v1315_v20, 2  ;;  %vm1338_vm8 = vcmask 253952  }
 0xe0a   :  { %1352 = dma.vmem_to_hbm [thread:$0]  %s1347_s13, 256, %s2257_s11, [#allocation4], %s1777_s0, %s1777_s0, %s1778_s20  }
 0xe0b   :  { %v1311_v26 = vrot.slane %v1310_v24, 1  ;;  %v1317_v54 = vadd.f32 %v1316_v25, %v1315_v20  ;;  %s1779_s4 = smov [#allocation11]  }
 0xe0c   :  { %s1358_s25 = sshll.u32 %s1779_s4, 4  ;;  %s1359_s25 = int_to_ptr.vmem [resolvable:$true] %s1358_s25 }
 0xe0d   :  { %v1312_v29 = vadd.f32 %v1311_v26, %v1310_v24  ;;  %v1318_v30 = vrot.slane %v1317_v54, 1  ;;  %s1733_s11 = scalar_lea.vmem %s1359_s25, 32  ;;  %p1738_p13 = scmp.lt.s32.totalorder %s1359_s25, %s1359_s25 }
 0xe0e   :  { %p1734_p12 = scmp.ne.s32.totalorder %s1359_s25, %s1733_s11  ;;  %p1739_p0 = scmp.lt.s32.totalorder %s1733_s11, %s1733_s11 }
 0xe0f   :  { %1332 = vrot.lane.b32.xlu0 %v1312_v29, %s1767_s15  ;;  %v1319_v31 = vadd.f32 %v1318_v30, %v1317_v54 }
 0xe10   :  { %p1740_p1 = por %p1739_p0, %p1738_p13 }
 0xe11   :  { %1334 = vrot.lane.b32.xlu1 %v1319_v31, %s1767_s15 }
 0xe12   :  { %p1741_p2 = pnand %p1740_p1, %p1734_p12 }
 0xe81   :  { %v1333_v27 = vpop.permute.xlu0 %1332 }
 0xe82   :  { %1339 = vst.msk [vmem:[#allocation11] sm:$0x1] %vm1338_vm8, %v1333_v27 }
 0xe83   :  { %v1335_v32 = vpop.permute.xlu1 %1334 }
 0xe84   :  { %1340 = vst.msk [vmem:[#allocation11 + $0x1] sm:$0x1] %vm1338_vm8, %v1335_v32 }
 0xe85   :  { %1744 = shalt.err (!%p1741_p2)
}
 0xe86   :  { %s1745_s10 = scalar_lea.hbm %s2258_s12, 32 }
 0xe87   :  { %p1746_p3 = scmp.ne.s32.totalorder %s2258_s12, %s1745_s10  ;;  %p1749_p4 = scmp.lt.u32.totalorder %s1745_s10, %s2258_s12 }
 0xe89   :  { %p1751_p5 = pnand %p1749_p4, %p1746_p3 }
 0xe8b   :  { %1754 = shalt.err (!%p1751_p5)
}
 0xe8c   :  { %s1780_s7 = smov 16   ;;  %s1781_s8 = smov 1  }
 0xe8d   :  { %1364 = dma.vmem_to_hbm [thread:$0]  %s1359_s25, 32, %s2258_s12, [#allocation12], %s1780_s7, %s1780_s7, %s1781_s8  }
 0xe8e   :  { %1761 = dma.done.wait [#allocation4], 256  }
 0xe8f   :  { %1762 = vsyncadd [#allocation4], 4294967040 }
 0xe90   :  { %1763 = dma.done.wait [#allocation12], 32  }
 0xe91   :  { %1764 = vsyncadd [#allocation12], 4294967264 }
 0xe92   :  { %1371 = vsyncpa [#allocation3], 1 }
 0xe93   :  { %1372 = vsyncpa [#allocation6], 1 }
 0xe94   :  { %1373 = vsyncpa [#allocation9], 1 }
 0xe95   :  { %1374 = vsyncpa [#allocation4], 1 }
 0xe96   :  { %1375 = vsyncpa [#allocation12], 1 }

</bundles_post_ra>
